<compile_context>
chip_gen: v7x
topology: tpu7x:2x2x1
jax: 0.10.0
libtpu: 0.0.40
codegen_flags: <defaults>
</compile_context>

<pallas_src>
import functools
import math

import jax
import jax.numpy as jnp
from jax import lax
from jax.experimental import pallas as pl
from jax.experimental.pallas import tpu as pltpu

EPS = 1e-6


def _layernorm(x, alpha, bias):
    """alpha * (x - mean) / (std_unbiased + eps) + bias  (matches the custom Norm)."""
    d = x.shape[-1]
    mean = jnp.mean(x, axis=-1, keepdims=True)
    cen = x - mean
    var = jnp.sum(cen * cen, axis=-1, keepdims=True) * (1.0 / (d - 1))
    inv = pl.reciprocal(jnp.sqrt(var) + EPS)        # divide -> reciprocal + multiply
    return cen * (alpha * inv) + bias


def encoder_layer_kernel(xq_ref, xkv_ref, mask_ref,
                         a1_ref, c1_ref,
                         wq_ref, bq_ref, wk_ref, bk_ref, wv_ref, bv_ref,
                         wo_ref, bo_ref,
                         a2_ref, c2_ref,
                         w1a_ref, w1b_ref, f1_ref, w2_ref, f2_ref,
                         o_ref,
                         k_scr, v_scr, q_scr, ho_scr, cat_scr, y_scr,
                         *, heads, d_k):
    tq = xq_ref.shape[1]
    scale = 1.0 / math.sqrt(d_k)

    # ---- hoisted: once per batch row (q axis is "arbitrary", scratch carries) --
    @pl.when(pl.program_id(1) == 0)
    def _hoist_kv():
        x2kv = _layernorm(xkv_ref[0].astype(jnp.float32),
                          a1_ref[...], c1_ref[...]).astype(jnp.bfloat16)
        k_full = (jnp.dot(x2kv, wk_ref[...], preferred_element_type=jnp.float32)
                  + bk_ref[...]).astype(jnp.bfloat16)              # (S, D)
        v_full = (jnp.dot(x2kv, wv_ref[...], preferred_element_type=jnp.float32)
                  + bv_ref[...]).astype(jnp.bfloat16)              # (S, D)
        # static loop: cheap bf16 slice copies only (no big live temporaries)
        for h in range(heads):
            k_scr[h] = k_full[:, h * d_k:(h + 1) * d_k]
            v_scr[h] = v_full[:, h * d_k:(h + 1) * d_k]

    # ---- per q-tile -------------------------------------------------------------
    xq = xq_ref[0].astype(jnp.float32)                             # (TQ, D) residual
    x2q = _layernorm(xq, a1_ref[...], c1_ref[...]).astype(jnp.bfloat16)

    # full-width Q projection (one (TQ,D)@(D,D) MXU pass); per-head split after
    q_full = ((jnp.dot(x2q, wq_ref[...], preferred_element_type=jnp.float32)
               + bq_ref[...]) * scale).astype(jnp.bfloat16)
    for h in range(heads):
        q_scr[h] = q_full[:, h * d_k:(h + 1) * d_k]

    # additive mask bias, hoisted out of the head loop            (1, S) f32
    mask_bias = jnp.where(mask_ref[0] == 0.0, -1e9, 0.0).astype(jnp.float32)

    # attention: fori_loop bounds the (TQ,S) temporaries' live range to one head
    def head_body(h, carry):
        s = jnp.einsum("qc,kc->qk", q_scr[h], k_scr[h],
                       preferred_element_type=jnp.float32) + mask_bias
        s = s - jnp.max(s, axis=-1, keepdims=True)
        p = jnp.exp(s)                                             # (TQ, S) f32
        denom = jnp.sum(p, axis=-1, keepdims=True)                 # (TQ, 1)
        ho = jnp.dot(p.astype(jnp.bfloat16), v_scr[h],
                     preferred_element_type=jnp.float32)           # unnormalized P@V
        ho_scr[h] = (ho * pl.reciprocal(denom, approx=True)).astype(jnp.bfloat16)
        return carry

    lax.fori_loop(0, heads, head_body, 0)

    # lane-concatenate the heads, then ONE full-width output projection
    for h in range(heads):
        cat_scr[:, h * d_k:(h + 1) * d_k] = ho_scr[h]
    attn = (jnp.dot(cat_scr[...], wo_ref[...], preferred_element_type=jnp.float32)
            + bo_ref[...])

    y = xq + attn                                                  # (TQ, D)

    # ---- pyramid pair split + norm_2 + pair-merge feed-forward (fused) ----------
    y_scr[...] = y
    tq2 = tq // 2
    ye = y_scr[pl.ds(0, tq2, stride=2), :]                         # tokens 0,2,4,...
    yo = y_scr[pl.ds(1, tq2, stride=2), :]                         # tokens 1,3,5,...

    x2e = _layernorm(ye, a2_ref[...], c2_ref[...]).astype(jnp.bfloat16)
    x2o = _layernorm(yo, a2_ref[...], c2_ref[...]).astype(jnp.bfloat16)

    hid = (jnp.dot(x2e, w1a_ref[...], preferred_element_type=jnp.float32)
           + jnp.dot(x2o, w1b_ref[...], preferred_element_type=jnp.float32)
           + f1_ref[...])
    hid = jnp.maximum(hid, 0.0)
    ff = jnp.dot(hid.astype(jnp.bfloat16), w2_ref[...],
                 preferred_element_type=jnp.float32) + f2_ref[...]

    o_ref[0] = ((ye + yo) * 0.5 + ff).astype(o_ref.dtype)


def _vmem_capacity_bytes():
    try:
        return int(pltpu.get_tpu_info().vmem_capacity_bytes)
    except Exception:
        return 128 * 1024 * 1024      # v5e/v6e physical VMEM as fallback


def _pick_q_tile(s, vmem_cap):
    # q-tile must divide S, keep token pairs together, and (when < S) satisfy the
    # (8,128) sublane rule for the (TQ,D) input block and (TQ/2,D) output block.
    # Cap the tile on small-VMEM generations (v7x: 64 MiB per TC).
    cap = 256 if vmem_cap < 96 * 1024 * 1024 else 512
    if s <= cap:
        return s
    for cand in (cap, 256, 128, 64, 32, 16):
        if s % cand == 0:
            return cand
    return s


def encoder_layer_forward(x, mask, params, *, tq=None):
    B, S, D = x.shape
    heads = params["heads"]
    assert D % heads == 0 and S % 2 == 0
    d_k = D // heads
    d_ff = params["w2"].shape[0]

    vmem_cap = _vmem_capacity_bytes()
    # leave headroom under the physical per-core capacity (v7x ~52 MiB, v5e/v6e 112 MiB)
    vmem_limit = max(32 * 1024 * 1024,
                     min(vmem_cap - 12 * 1024 * 1024, 112 * 1024 * 1024))

    tq = _pick_q_tile(S, vmem_cap) if tq is None else tq
    assert S % tq == 0 and tq % 2 == 0
    n_qt = S // tq
    tq2 = tq // 2

    bf16 = jnp.bfloat16
    # Full-width (D,D) attention weights feed the MXU at full lane width; per-head
    # splitting is done in-kernel on the activation side (leading-dim scratch).
    wq = params["wq"].astype(bf16)
    wk = params["wk"].astype(bf16)
    wv = params["wv"].astype(bf16)
    wo = params["wo"].astype(bf16)
    # FeedForward_enc pair-merge: W1 = [W1a; W1b] so no in-kernel (S,D)->(S/2,2D) reshape.
    w1a = params["w1"][:D, :].astype(bf16)
    w1b = params["w1"][D:, :].astype(bf16)
    w2 = params["w2"].astype(bf16)

    weights = [params["alpha1"], params["bias1"],
               wq, params["bq"], wk, params["bk"], wv, params["bv"],
               wo, params["bo"],
               params["alpha2"], params["bias2"],
               w1a, w1b, params["b1"], w2, params["b2"]]

    def const_spec(arr):
        return pl.BlockSpec(arr.shape, lambda b, q, _nd=arr.ndim: (0,) * _nd)

    in_specs = ([pl.BlockSpec((1, tq, D), lambda b, q: (b, q, 0)),   # q-tile rows (f32)
                 pl.BlockSpec((1, S, D), lambda b, q: (b, 0, 0)),    # full seq for K/V (bf16)
                 pl.BlockSpec((1, 1, S), lambda b, q: (b, 0, 0))]    # mask
                + [const_spec(w) for w in weights])

    # Advisory cost estimate: weights/xkv blocks are resident across q (counted once/row).
    flops = int(4 * B * S * D * D                        # K,V projections (once per row)
                + 2 * B * S * D * D                      # Q projection
                + 2 * B * S * D * D                      # output projection
                + 4 * B * S * S * D                      # QK^T + P@V over all heads
                + 2 * B * (S // 2) * (3 * D * d_ff))     # pair-merge FF
    transcendentals = int(B * heads * S * S)
    weight_bytes = sum(int(w.size) * w.dtype.itemsize for w in weights)
    bytes_accessed = int(x.dtype.itemsize * x.size           # f32 q stream
                         + 2 * x.size                        # bf16 kv stream (once per row)
                         + mask.dtype.itemsize * mask.size
                         + x.dtype.itemsize * B * (S // 2) * D
                         + weight_bytes)

    kernel = functools.partial(encoder_layer_kernel, heads=heads, d_k=d_k)
    return pl.pallas_call(
        kernel,
        out_shape=jax.ShapeDtypeStruct((B, S // 2, D), x.dtype),
        grid=(B, n_qt),
        in_specs=in_specs,
        out_specs=pl.BlockSpec((1, tq2, D), lambda b, q: (b, q, 0)),
        scratch_shapes=[
            pltpu.VMEM((heads, S, d_k), bf16),       # K (per-head, carried across q)
            pltpu.VMEM((heads, S, d_k), bf16),       # V (per-head, carried across q)
            pltpu.VMEM((heads, tq, d_k), bf16),      # Q (per-head, this tile)
            pltpu.VMEM((heads, tq, d_k), bf16),      # per-head attention outputs
            pltpu.VMEM((tq, D), bf16),               # lane-concat of heads for Wo
            pltpu.VMEM((tq, D), jnp.float32),        # residual y for the pair split
        ],
        # q axis must be sequential ("arbitrary"): the K/V scratch carries across it.
        compiler_params=pltpu.CompilerParams(
            dimension_semantics=("parallel", "arbitrary"),
            vmem_limit_bytes=int(vmem_limit)),
        cost_estimate=pl.CostEstimate(flops=flops,
                                      transcendentals=transcendentals,
                                      bytes_accessed=bytes_accessed),
    )(x, x.astype(bf16), mask, *weights)


def init_params(key, d_model, heads, d_ff):
    ks = jax.random.split(key, 6)

    def lin(k, din, dout):
        return jax.random.normal(k, (din, dout), jnp.float32) * (1.0 / math.sqrt(din))

    return dict(
        heads=heads,
        # Norm params (torch: ones / zeros)
        alpha1=jnp.ones((1, d_model), jnp.float32),
        bias1=jnp.zeros((1, d_model), jnp.float32),
        alpha2=jnp.ones((1, d_model), jnp.float32),
        bias2=jnp.zeros((1, d_model), jnp.float32),
        # attention projections, stored as (in, out) so y = x @ W + b
        wq=lin(ks[0], d_model, d_model), bq=jnp.zeros((1, d_model), jnp.float32),
        wk=lin(ks[1], d_model, d_model), bk=jnp.zeros((1, d_model), jnp.float32),
        wv=lin(ks[2], d_model, d_model), bv=jnp.zeros((1, d_model), jnp.float32),
        wo=lin(ks[3], d_model, d_model), bo=jnp.zeros((1, d_model), jnp.float32),
        # FeedForward_enc: Linear(2*d_model -> d_ff) -> ReLU -> Linear(d_ff -> d_model)
        w1=lin(ks[4], 2 * d_model, d_ff), b1=jnp.zeros((1, d_ff), jnp.float32),
        w2=lin(ks[5], d_ff, d_model), b2=jnp.zeros((1, d_model), jnp.float32),
    )


if __name__ == "__main__":
    B, S, D, H, DFF = 2, 8, 32, 4, 64     # batch, seq, d_model, heads, d_ff
    key = jax.random.PRNGKey(0)
    kx, kp = jax.random.split(key)

    x = jax.random.normal(kx, (B, S, D), jnp.float32)
    mask = jnp.ones((B, 1, S), jnp.float32).at[1, 0, S - 1].set(0.0)
    params = init_params(kp, D, H, DFF)

    out = encoder_layer_forward(x, mask, params)
    jax.block_until_ready(out)
    assert out.shape == (B, S // 2, D), out.shape
    assert bool(jnp.all(jnp.isfinite(out)))
    print("KERNEL_OK")
</pallas_src>

<mosaic_0001>
module attributes {stable_mosaic.version = 11 : i64} {
  func.func @encoder_layer_kernel(%arg0: i32, %arg1: i32, %arg2: memref<1x8x32xf32, #tpu.memory_space<vmem>>, %arg3: memref<1x8x32xbf16, #tpu.memory_space<vmem>>, %arg4: memref<1x1x8xf32, #tpu.memory_space<vmem>>, %arg5: memref<1x32xf32, #tpu.memory_space<vmem>>, %arg6: memref<1x32xf32, #tpu.memory_space<vmem>>, %arg7: memref<32x32xbf16, #tpu.memory_space<vmem>>, %arg8: memref<1x32xf32, #tpu.memory_space<vmem>>, %arg9: memref<32x32xbf16, #tpu.memory_space<vmem>>, %arg10: memref<1x32xf32, #tpu.memory_space<vmem>>, %arg11: memref<32x32xbf16, #tpu.memory_space<vmem>>, %arg12: memref<1x32xf32, #tpu.memory_space<vmem>>, %arg13: memref<32x32xbf16, #tpu.memory_space<vmem>>, %arg14: memref<1x32xf32, #tpu.memory_space<vmem>>, %arg15: memref<1x32xf32, #tpu.memory_space<vmem>>, %arg16: memref<1x32xf32, #tpu.memory_space<vmem>>, %arg17: memref<32x64xbf16, #tpu.memory_space<vmem>>, %arg18: memref<32x64xbf16, #tpu.memory_space<vmem>>, %arg19: memref<1x64xf32, #tpu.memory_space<vmem>>, %arg20: memref<64x32xbf16, #tpu.memory_space<vmem>>, %arg21: memref<1x32xf32, #tpu.memory_space<vmem>>, %arg22: memref<1x4x32xf32, #tpu.memory_space<vmem>>, %arg23: memref<4x8x8xbf16, #tpu.memory_space<vmem>>, %arg24: memref<4x8x8xbf16, #tpu.memory_space<vmem>>, %arg25: memref<4x8x8xbf16, #tpu.memory_space<vmem>>, %arg26: memref<4x8x8xbf16, #tpu.memory_space<vmem>>, %arg27: memref<8x32xbf16, #tpu.memory_space<vmem>>, %arg28: memref<8x32xf32, #tpu.memory_space<vmem>>) attributes {dimension_semantics = [#tpu.dimension_semantics<parallel>, #tpu.dimension_semantics<arbitrary>], iteration_bounds = array<i64: 2, 1>, scalar_prefetch = 0 : i64, scratch_operands = 6 : i64, tpu.core_type = #tpu.core_type<tc>, window_params = [{transform_indices = @transform_0, window_bounds = array<i64: 1, 8, 32>}, {transform_indices = @transform_1, window_bounds = array<i64: 1, 8, 32>}, {transform_indices = @transform_2, window_bounds = array<i64: 1, 1, 8>}, {pipeline_mode = #tpu.pipeline_mode<synchronous>, transform_indices = @transform_3, window_bounds = array<i64: 1, 32>}, {pipeline_mode = #tpu.pipeline_mode<synchronous>, transform_indices = @transform_4, window_bounds = array<i64: 1, 32>}, {pipeline_mode = #tpu.pipeline_mode<synchronous>, transform_indices = @transform_5, window_bounds = array<i64: 32, 32>}, {pipeline_mode = #tpu.pipeline_mode<synchronous>, transform_indices = @transform_6, window_bounds = array<i64: 1, 32>}, {pipeline_mode = #tpu.pipeline_mode<synchronous>, transform_indices = @transform_7, window_bounds = array<i64: 32, 32>}, {pipeline_mode = #tpu.pipeline_mode<synchronous>, transform_indices = @transform_8, window_bounds = array<i64: 1, 32>}, {pipeline_mode = #tpu.pipeline_mode<synchronous>, transform_indices = @transform_9, window_bounds = array<i64: 32, 32>}, {pipeline_mode = #tpu.pipeline_mode<synchronous>, transform_indices = @transform_10, window_bounds = array<i64: 1, 32>}, {pipeline_mode = #tpu.pipeline_mode<synchronous>, transform_indices = @transform_11, window_bounds = array<i64: 32, 32>}, {pipeline_mode = #tpu.pipeline_mode<synchronous>, transform_indices = @transform_12, window_bounds = array<i64: 1, 32>}, {pipeline_mode = #tpu.pipeline_mode<synchronous>, transform_indices = @transform_13, window_bounds = array<i64: 1, 32>}, {pipeline_mode = #tpu.pipeline_mode<synchronous>, transform_indices = @transform_14, window_bounds = array<i64: 1, 32>}, {pipeline_mode = #tpu.pipeline_mode<synchronous>, transform_indices = @transform_15, window_bounds = array<i64: 32, 64>}, {pipeline_mode = #tpu.pipeline_mode<synchronous>, transform_indices = @transform_16, window_bounds = array<i64: 32, 64>}, {pipeline_mode = #tpu.pipeline_mode<synchronous>, transform_indices = @transform_17, window_bounds = array<i64: 1, 64>}, {pipeline_mode = #tpu.pipeline_mode<synchronous>, transform_indices = @transform_18, window_bounds = array<i64: 64, 32>}, {pipeline_mode = #tpu.pipeline_mode<synchronous>, transform_indices = @transform_19, window_bounds = array<i64: 1, 32>}, {transform_indices = @transform_20, window_bounds = array<i64: 1, 4, 32>}]} {
    %c0_i32 = arith.constant 0 : i32
    %0 = arith.cmpi eq, %arg1, %c0_i32 : i32
    %1 = arith.extui %0 : i1 to i32
    %c0_i32_0 = arith.constant 0 : i32
    %2 = arith.cmpi ne, %1, %c0_i32_0 : i32
    scf.if %2 {
      %c0_100 = arith.constant 0 : index
      %c0_101 = arith.constant 0 : index
      %c0_102 = arith.constant 0 : index
      %154 = vector.load %arg3[%c0_100, %c0_101, %c0_102] : memref<1x8x32xbf16, #tpu.memory_space<vmem>>, vector<1x8x32xbf16>
      %155 = vector.shape_cast %154 : vector<1x8x32xbf16> to vector<8x32xbf16>
      %156 = arith.extf %155 : vector<8x32xbf16> to vector<8x32xf32>
      %c0_103 = arith.constant 0 : index
      %c0_104 = arith.constant 0 : index
      %157 = vector.load %arg5[%c0_103, %c0_104] : memref<1x32xf32, #tpu.memory_space<vmem>>, vector<1x32xf32>
      %c0_105 = arith.constant 0 : index
      %c0_106 = arith.constant 0 : index
      %158 = vector.load %arg6[%c0_105, %c0_106] : memref<1x32xf32, #tpu.memory_space<vmem>>, vector<1x32xf32>
      %cst_107 = arith.constant dense<0.000000e+00> : vector<8xf32>
      %159 = vector.multi_reduction <add>, %156, %cst_107 [1] : vector<8x32xf32> to vector<8xf32>
      %160 = vector.shape_cast %159 : vector<8xf32> to vector<8x1xf32>
      %cst_108 = arith.constant 3.200000e+01 : f32
      %161 = vector.broadcast %cst_108 : f32 to vector<8x1xf32>
      %162 = arith.divf %160, %161 : vector<8x1xf32>
      %163 = vector.broadcast %162 : vector<8x1xf32> to vector<8x32xf32>
      %164 = arith.subf %156, %163 : vector<8x32xf32>
      %165 = arith.mulf %164, %164 : vector<8x32xf32>
      %cst_109 = arith.constant dense<0.000000e+00> : vector<8xf32>
      %166 = vector.multi_reduction <add>, %165, %cst_109 [1] : vector<8x32xf32> to vector<8xf32>
      %167 = vector.shape_cast %166 : vector<8xf32> to vector<8x1xf32>
      %cst_110 = arith.constant 0.0322580636 : f32
      %168 = vector.broadcast %cst_110 : f32 to vector<8x1xf32>
      %169 = arith.mulf %167, %168 : vector<8x1xf32>
      %170 = math.sqrt %169 : vector<8x1xf32>
      %cst_111 = arith.constant 9.99999997E-7 : f32
      %171 = vector.broadcast %cst_111 : f32 to vector<8x1xf32>
      %172 = arith.addf %170, %171 : vector<8x1xf32>
      %173 = tpu.reciprocal %172 : vector<8x1xf32> -> vector<8x1xf32>
      %174 = vector.broadcast %157 : vector<1x32xf32> to vector<8x32xf32>
      %175 = vector.broadcast %173 : vector<8x1xf32> to vector<8x32xf32>
      %176 = arith.mulf %174, %175 : vector<8x32xf32>
      %177 = arith.mulf %164, %176 : vector<8x32xf32>
      %178 = vector.broadcast %158 : vector<1x32xf32> to vector<8x32xf32>
      %179 = arith.addf %177, %178 : vector<8x32xf32>
      %180 = arith.truncf %179 : vector<8x32xf32> to vector<8x32xbf16>
      %c0_112 = arith.constant 0 : index
      %c0_113 = arith.constant 0 : index
      %181 = vector.load %arg9[%c0_112, %c0_113] : memref<32x32xbf16, #tpu.memory_space<vmem>>, vector<32x32xbf16>
      %cst_114 = arith.constant dense<0.000000e+00> : vector<8x32xf32>
      %182 = tpu.matmul %180, %181, %cst_114 {dimension_numbers = #tpu.dot_dimension_numbers<[1], [0], [0], [1], [0, 0, 1, 1], [], []>} : vector<8x32xbf16>, vector<32x32xbf16>, vector<8x32xf32> -> vector<8x32xf32>
      %c0_115 = arith.constant 0 : index
      %c0_116 = arith.constant 0 : index
      %183 = vector.load %arg10[%c0_115, %c0_116] : memref<1x32xf32, #tpu.memory_space<vmem>>, vector<1x32xf32>
      %184 = vector.broadcast %183 : vector<1x32xf32> to vector<8x32xf32>
      %185 = arith.addf %182, %184 : vector<8x32xf32>
      %186 = arith.truncf %185 : vector<8x32xf32> to vector<8x32xbf16>
      %c0_117 = arith.constant 0 : index
      %c0_118 = arith.constant 0 : index
      %187 = vector.load %arg11[%c0_117, %c0_118] : memref<32x32xbf16, #tpu.memory_space<vmem>>, vector<32x32xbf16>
      %cst_119 = arith.constant dense<0.000000e+00> : vector<8x32xf32>
      %188 = tpu.matmul %180, %187, %cst_119 {dimension_numbers = #tpu.dot_dimension_numbers<[1], [0], [0], [1], [0, 0, 1, 1], [], []>} : vector<8x32xbf16>, vector<32x32xbf16>, vector<8x32xf32> -> vector<8x32xf32>
      %c0_120 = arith.constant 0 : index
      %c0_121 = arith.constant 0 : index
      %189 = vector.load %arg12[%c0_120, %c0_121] : memref<1x32xf32, #tpu.memory_space<vmem>>, vector<1x32xf32>
      %190 = vector.broadcast %189 : vector<1x32xf32> to vector<8x32xf32>
      %191 = arith.addf %188, %190 : vector<8x32xf32>
      %192 = arith.truncf %191 : vector<8x32xf32> to vector<8x32xbf16>
      %193 = vector.extract_strided_slice %186 {offsets = [0, 0], sizes = [8, 8], strides = [1, 1]} : vector<8x32xbf16> to vector<8x8xbf16>
      %c0_122 = arith.constant 0 : index
      %c0_123 = arith.constant 0 : index
      %c0_124 = arith.constant 0 : index
      %194 = vector.load %arg23[%c0_122, %c0_123, %c0_124] : memref<4x8x8xbf16, #tpu.memory_space<vmem>>, vector<1x8x8xbf16>
      %195 = vector.shape_cast %194 : vector<1x8x8xbf16> to vector<8x8xbf16>
      %196 = vector.shape_cast %193 : vector<8x8xbf16> to vector<1x8x8xbf16>
      tpu.vector_store %arg23[%c0_122, %c0_123, %c0_124], %196 {strides = array<i32>} : memref<4x8x8xbf16, #tpu.memory_space<vmem>>, vector<1x8x8xbf16>,
      %197 = vector.extract_strided_slice %192 {offsets = [0, 0], sizes = [8, 8], strides = [1, 1]} : vector<8x32xbf16> to vector<8x8xbf16>
      %c0_125 = arith.constant 0 : index
      %c0_126 = arith.constant 0 : index
      %c0_127 = arith.constant 0 : index
      %198 = vector.load %arg24[%c0_125, %c0_126, %c0_127] : memref<4x8x8xbf16, #tpu.memory_space<vmem>>, vector<1x8x8xbf16>
      %199 = vector.shape_cast %198 : vector<1x8x8xbf16> to vector<8x8xbf16>
      %200 = vector.shape_cast %197 : vector<8x8xbf16> to vector<1x8x8xbf16>
      tpu.vector_store %arg24[%c0_125, %c0_126, %c0_127], %200 {strides = array<i32>} : memref<4x8x8xbf16, #tpu.memory_space<vmem>>, vector<1x8x8xbf16>,
      %201 = vector.extract_strided_slice %186 {offsets = [0, 8], sizes = [8, 8], strides = [1, 1]} : vector<8x32xbf16> to vector<8x8xbf16>
      %c1_128 = arith.constant 1 : index
      %c0_129 = arith.constant 0 : index
      %c0_130 = arith.constant 0 : index
      %202 = vector.load %arg23[%c1_128, %c0_129, %c0_130] : memref<4x8x8xbf16, #tpu.memory_space<vmem>>, vector<1x8x8xbf16>
      %203 = vector.shape_cast %202 : vector<1x8x8xbf16> to vector<8x8xbf16>
      %204 = vector.shape_cast %201 : vector<8x8xbf16> to vector<1x8x8xbf16>
      tpu.vector_store %arg23[%c1_128, %c0_129, %c0_130], %204 {strides = array<i32>} : memref<4x8x8xbf16, #tpu.memory_space<vmem>>, vector<1x8x8xbf16>,
      %205 = vector.extract_strided_slice %192 {offsets = [0, 8], sizes = [8, 8], strides = [1, 1]} : vector<8x32xbf16> to vector<8x8xbf16>
      %c1_131 = arith.constant 1 : index
      %c0_132 = arith.constant 0 : index
      %c0_133 = arith.constant 0 : index
      %206 = vector.load %arg24[%c1_131, %c0_132, %c0_133] : memref<4x8x8xbf16, #tpu.memory_space<vmem>>, vector<1x8x8xbf16>
      %207 = vector.shape_cast %206 : vector<1x8x8xbf16> to vector<8x8xbf16>
      %208 = vector.shape_cast %205 : vector<8x8xbf16> to vector<1x8x8xbf16>
      tpu.vector_store %arg24[%c1_131, %c0_132, %c0_133], %208 {strides = array<i32>} : memref<4x8x8xbf16, #tpu.memory_space<vmem>>, vector<1x8x8xbf16>,
      %209 = vector.extract_strided_slice %186 {offsets = [0, 16], sizes = [8, 8], strides = [1, 1]} : vector<8x32xbf16> to vector<8x8xbf16>
      %c2_134 = arith.constant 2 : index
      %c0_135 = arith.constant 0 : index
      %c0_136 = arith.constant 0 : index
      %210 = vector.load %arg23[%c2_134, %c0_135, %c0_136] : memref<4x8x8xbf16, #tpu.memory_space<vmem>>, vector<1x8x8xbf16>
      %211 = vector.shape_cast %210 : vector<1x8x8xbf16> to vector<8x8xbf16>
      %212 = vector.shape_cast %209 : vector<8x8xbf16> to vector<1x8x8xbf16>
      tpu.vector_store %arg23[%c2_134, %c0_135, %c0_136], %212 {strides = array<i32>} : memref<4x8x8xbf16, #tpu.memory_space<vmem>>, vector<1x8x8xbf16>,
      %213 = vector.extract_strided_slice %192 {offsets = [0, 16], sizes = [8, 8], strides = [1, 1]} : vector<8x32xbf16> to vector<8x8xbf16>
      %c2_137 = arith.constant 2 : index
      %c0_138 = arith.constant 0 : index
      %c0_139 = arith.constant 0 : index
      %214 = vector.load %arg24[%c2_137, %c0_138, %c0_139] : memref<4x8x8xbf16, #tpu.memory_space<vmem>>, vector<1x8x8xbf16>
      %215 = vector.shape_cast %214 : vector<1x8x8xbf16> to vector<8x8xbf16>
      %216 = vector.shape_cast %213 : vector<8x8xbf16> to vector<1x8x8xbf16>
      tpu.vector_store %arg24[%c2_137, %c0_138, %c0_139], %216 {strides = array<i32>} : memref<4x8x8xbf16, #tpu.memory_space<vmem>>, vector<1x8x8xbf16>,
      %217 = vector.extract_strided_slice %186 {offsets = [0, 24], sizes = [8, 8], strides = [1, 1]} : vector<8x32xbf16> to vector<8x8xbf16>
      %c3_140 = arith.constant 3 : index
      %c0_141 = arith.constant 0 : index
      %c0_142 = arith.constant 0 : index
      %218 = vector.load %arg23[%c3_140, %c0_141, %c0_142] : memref<4x8x8xbf16, #tpu.memory_space<vmem>>, vector<1x8x8xbf16>
      %219 = vector.shape_cast %218 : vector<1x8x8xbf16> to vector<8x8xbf16>
      %220 = vector.shape_cast %217 : vector<8x8xbf16> to vector<1x8x8xbf16>
      tpu.vector_store %arg23[%c3_140, %c0_141, %c0_142], %220 {strides = array<i32>} : memref<4x8x8xbf16, #tpu.memory_space<vmem>>, vector<1x8x8xbf16>,
      %221 = vector.extract_strided_slice %192 {offsets = [0, 24], sizes = [8, 8], strides = [1, 1]} : vector<8x32xbf16> to vector<8x8xbf16>
      %c3_143 = arith.constant 3 : index
      %c0_144 = arith.constant 0 : index
      %c0_145 = arith.constant 0 : index
      %222 = vector.load %arg24[%c3_143, %c0_144, %c0_145] : memref<4x8x8xbf16, #tpu.memory_space<vmem>>, vector<1x8x8xbf16>
      %223 = vector.shape_cast %222 : vector<1x8x8xbf16> to vector<8x8xbf16>
      %224 = vector.shape_cast %221 : vector<8x8xbf16> to vector<1x8x8xbf16>
      tpu.vector_store %arg24[%c3_143, %c0_144, %c0_145], %224 {strides = array<i32>} : memref<4x8x8xbf16, #tpu.memory_space<vmem>>, vector<1x8x8xbf16>,
    } else {
    }
    %c0 = arith.constant 0 : index
    %c0_1 = arith.constant 0 : index
    %c0_2 = arith.constant 0 : index
    %3 = vector.load %arg2[%c0, %c0_1, %c0_2] : memref<1x8x32xf32, #tpu.memory_space<vmem>>, vector<1x8x32xf32>
    %4 = vector.shape_cast %3 : vector<1x8x32xf32> to vector<8x32xf32>
    %c0_3 = arith.constant 0 : index
    %c0_4 = arith.constant 0 : index
    %5 = vector.load %arg5[%c0_3, %c0_4] : memref<1x32xf32, #tpu.memory_space<vmem>>, vector<1x32xf32>
    %c0_5 = arith.constant 0 : index
    %c0_6 = arith.constant 0 : index
    %6 = vector.load %arg6[%c0_5, %c0_6] : memref<1x32xf32, #tpu.memory_space<vmem>>, vector<1x32xf32>
    %cst = arith.constant dense<0.000000e+00> : vector<8xf32>
    %7 = vector.multi_reduction <add>, %4, %cst [1] : vector<8x32xf32> to vector<8xf32>
    %8 = vector.shape_cast %7 : vector<8xf32> to vector<8x1xf32>
    %cst_7 = arith.constant 3.200000e+01 : f32
    %9 = vector.broadcast %cst_7 : f32 to vector<8x1xf32>
    %10 = arith.divf %8, %9 : vector<8x1xf32>
    %11 = vector.broadcast %10 : vector<8x1xf32> to vector<8x32xf32>
    %12 = arith.subf %4, %11 : vector<8x32xf32>
    %13 = arith.mulf %12, %12 : vector<8x32xf32>
    %cst_8 = arith.constant dense<0.000000e+00> : vector<8xf32>
    %14 = vector.multi_reduction <add>, %13, %cst_8 [1] : vector<8x32xf32> to vector<8xf32>
    %15 = vector.shape_cast %14 : vector<8xf32> to vector<8x1xf32>
    %cst_9 = arith.constant 0.0322580636 : f32
    %16 = vector.broadcast %cst_9 : f32 to vector<8x1xf32>
    %17 = arith.mulf %15, %16 : vector<8x1xf32>
    %18 = math.sqrt %17 : vector<8x1xf32>
    %cst_10 = arith.constant 9.99999997E-7 : f32
    %19 = vector.broadcast %cst_10 : f32 to vector<8x1xf32>
    %20 = arith.addf %18, %19 : vector<8x1xf32>
    %21 = tpu.reciprocal %20 : vector<8x1xf32> -> vector<8x1xf32>
    %22 = vector.broadcast %5 : vector<1x32xf32> to vector<8x32xf32>
    %23 = vector.broadcast %21 : vector<8x1xf32> to vector<8x32xf32>
    %24 = arith.mulf %22, %23 : vector<8x32xf32>
    %25 = arith.mulf %12, %24 : vector<8x32xf32>
    %26 = vector.broadcast %6 : vector<1x32xf32> to vector<8x32xf32>
    %27 = arith.addf %25, %26 : vector<8x32xf32>
    %28 = arith.truncf %27 : vector<8x32xf32> to vector<8x32xbf16>
    %c0_11 = arith.constant 0 : index
    %c0_12 = arith.constant 0 : index
    %29 = vector.load %arg7[%c0_11, %c0_12] : memref<32x32xbf16, #tpu.memory_space<vmem>>, vector<32x32xbf16>
    %cst_13 = arith.constant dense<0.000000e+00> : vector<8x32xf32>
    %30 = tpu.matmul %28, %29, %cst_13 {dimension_numbers = #tpu.dot_dimension_numbers<[1], [0], [0], [1], [0, 0, 1, 1], [], []>} : vector<8x32xbf16>, vector<32x32xbf16>, vector<8x32xf32> -> vector<8x32xf32>
    %c0_14 = arith.constant 0 : index
    %c0_15 = arith.constant 0 : index
    %31 = vector.load %arg8[%c0_14, %c0_15] : memref<1x32xf32, #tpu.memory_space<vmem>>, vector<1x32xf32>
    %32 = vector.broadcast %31 : vector<1x32xf32> to vector<8x32xf32>
    %33 = arith.addf %30, %32 : vector<8x32xf32>
    %cst_16 = arith.constant 0.353553385 : f32
    %34 = vector.broadcast %cst_16 : f32 to vector<8x32xf32>
    %35 = arith.mulf %33, %34 : vector<8x32xf32>
    %36 = arith.truncf %35 : vector<8x32xf32> to vector<8x32xbf16>
    %37 = vector.extract_strided_slice %36 {offsets = [0, 0], sizes = [8, 8], strides = [1, 1]} : vector<8x32xbf16> to vector<8x8xbf16>
    %c0_17 = arith.constant 0 : index
    %c0_18 = arith.constant 0 : index
    %c0_19 = arith.constant 0 : index
    %38 = vector.load %arg25[%c0_17, %c0_18, %c0_19] : memref<4x8x8xbf16, #tpu.memory_space<vmem>>, vector<1x8x8xbf16>
    %39 = vector.shape_cast %38 : vector<1x8x8xbf16> to vector<8x8xbf16>
    %40 = vector.shape_cast %37 : vector<8x8xbf16> to vector<1x8x8xbf16>
    tpu.vector_store %arg25[%c0_17, %c0_18, %c0_19], %40 {strides = array<i32>} : memref<4x8x8xbf16, #tpu.memory_space<vmem>>, vector<1x8x8xbf16>,
    %41 = vector.extract_strided_slice %36 {offsets = [0, 8], sizes = [8, 8], strides = [1, 1]} : vector<8x32xbf16> to vector<8x8xbf16>
    %c1 = arith.constant 1 : index
    %c0_20 = arith.constant 0 : index
    %c0_21 = arith.constant 0 : index
    %42 = vector.load %arg25[%c1, %c0_20, %c0_21] : memref<4x8x8xbf16, #tpu.memory_space<vmem>>, vector<1x8x8xbf16>
    %43 = vector.shape_cast %42 : vector<1x8x8xbf16> to vector<8x8xbf16>
    %44 = vector.shape_cast %41 : vector<8x8xbf16> to vector<1x8x8xbf16>
    tpu.vector_store %arg25[%c1, %c0_20, %c0_21], %44 {strides = array<i32>} : memref<4x8x8xbf16, #tpu.memory_space<vmem>>, vector<1x8x8xbf16>,
    %45 = vector.extract_strided_slice %36 {offsets = [0, 16], sizes = [8, 8], strides = [1, 1]} : vector<8x32xbf16> to vector<8x8xbf16>
    %c2 = arith.constant 2 : index
    %c0_22 = arith.constant 0 : index
    %c0_23 = arith.constant 0 : index
    %46 = vector.load %arg25[%c2, %c0_22, %c0_23] : memref<4x8x8xbf16, #tpu.memory_space<vmem>>, vector<1x8x8xbf16>
    %47 = vector.shape_cast %46 : vector<1x8x8xbf16> to vector<8x8xbf16>
    %48 = vector.shape_cast %45 : vector<8x8xbf16> to vector<1x8x8xbf16>
    tpu.vector_store %arg25[%c2, %c0_22, %c0_23], %48 {strides = array<i32>} : memref<4x8x8xbf16, #tpu.memory_space<vmem>>, vector<1x8x8xbf16>,
    %49 = vector.extract_strided_slice %36 {offsets = [0, 24], sizes = [8, 8], strides = [1, 1]} : vector<8x32xbf16> to vector<8x8xbf16>
    %c3 = arith.constant 3 : index
    %c0_24 = arith.constant 0 : index
    %c0_25 = arith.constant 0 : index
    %50 = vector.load %arg25[%c3, %c0_24, %c0_25] : memref<4x8x8xbf16, #tpu.memory_space<vmem>>, vector<1x8x8xbf16>
    %51 = vector.shape_cast %50 : vector<1x8x8xbf16> to vector<8x8xbf16>
    %52 = vector.shape_cast %49 : vector<8x8xbf16> to vector<1x8x8xbf16>
    tpu.vector_store %arg25[%c3, %c0_24, %c0_25], %52 {strides = array<i32>} : memref<4x8x8xbf16, #tpu.memory_space<vmem>>, vector<1x8x8xbf16>,
    %c0_26 = arith.constant 0 : index
    %c0_27 = arith.constant 0 : index
    %c0_28 = arith.constant 0 : index
    %53 = vector.load %arg4[%c0_26, %c0_27, %c0_28] : memref<1x1x8xf32, #tpu.memory_space<vmem>>, vector<1x1x8xf32>
    %54 = vector.shape_cast %53 : vector<1x1x8xf32> to vector<1x8xf32>
    %cst_29 = arith.constant 0.000000e+00 : f32
    %55 = vector.broadcast %cst_29 : f32 to vector<1x8xf32>
    %56 = arith.cmpf oeq, %54, %55 : vector<1x8xf32>
    %cst_30 = arith.constant -1.000000e+09 : f32
    %cst_31 = arith.constant 0.000000e+00 : f32
    %57 = vector.broadcast %cst_30 : f32 to vector<1x8xf32>
    %58 = vector.broadcast %cst_31 : f32 to vector<1x8xf32>
    %59 = arith.select %56, %57, %58 : vector<1x8xi1>, vector<1x8xf32>
    %c0_i32_32 = arith.constant 0 : i32
    %c4_i32 = arith.constant 4 : i32
    %60 = arith.addi %c0_i32_32, %c4_i32 : i32
    %c1_i32 = arith.constant 1 : i32
    scf.for %arg29 = %c0_i32_32 to %60 step %c1_i32  : i32 {
      %154 = arith.index_cast %arg29 : i32 to index
      %c0_100 = arith.constant 0 : index
      %c0_101 = arith.constant 0 : index
      %155 = vector.load %arg25[%154, %c0_100, %c0_101] : memref<4x8x8xbf16, #tpu.memory_space<vmem>>, vector<1x8x8xbf16>
      %156 = vector.shape_cast %155 : vector<1x8x8xbf16> to vector<8x8xbf16>
      %157 = arith.index_cast %arg29 : i32 to index
      %c0_102 = arith.constant 0 : index
      %c0_103 = arith.constant 0 : index
      %158 = vector.load %arg23[%157, %c0_102, %c0_103] : memref<4x8x8xbf16, #tpu.memory_space<vmem>>, vector<1x8x8xbf16>
      %159 = vector.shape_cast %158 : vector<1x8x8xbf16> to vector<8x8xbf16>
      "tpu.trace_start"() <{level = 10 : i32, message = "qc,kc->qk"}> : () -> ()
      %cst_104 = arith.constant dense<0.000000e+00> : vector<8x8xf32>
      %160 = tpu.matmul %156, %159, %cst_104 {dimension_numbers = #tpu.dot_dimension_numbers<[1], [1], [0], [0], [0, 0, 1, 0], [], []>} : vector<8x8xbf16>, vector<8x8xbf16>, vector<8x8xf32> -> vector<8x8xf32>
      "tpu.trace_stop"() : () -> ()
      %161 = vector.broadcast %59 : vector<1x8xf32> to vector<8x8xf32>
      %162 = arith.addf %160, %161 : vector<8x8xf32>
      %cst_105 = arith.constant dense<0xFF800000> : vector<8xf32>
      %163 = vector.multi_reduction <maximumf>, %162, %cst_105 [1] : vector<8x8xf32> to vector<8xf32>
      %164 = vector.shape_cast %163 : vector<8xf32> to vector<8x1xf32>
      %165 = vector.broadcast %164 : vector<8x1xf32> to vector<8x8xf32>
      %166 = arith.subf %162, %165 : vector<8x8xf32>
      %167 = math.exp %166 : vector<8x8xf32>
      %cst_106 = arith.constant dense<0.000000e+00> : vector<8xf32>
      %168 = vector.multi_reduction <add>, %167, %cst_106 [1] : vector<8x8xf32> to vector<8xf32>
      %169 = vector.shape_cast %168 : vector<8xf32> to vector<8x1xf32>
      %170 = arith.truncf %167 : vector<8x8xf32> to vector<8x8xbf16>
      %171 = arith.index_cast %arg29 : i32 to index
      %c0_107 = arith.constant 0 : index
      %c0_108 = arith.constant 0 : index
      %172 = vector.load %arg24[%171, %c0_107, %c0_108] : memref<4x8x8xbf16, #tpu.memory_space<vmem>>, vector<1x8x8xbf16>
      %173 = vector.shape_cast %172 : vector<1x8x8xbf16> to vector<8x8xbf16>
      %cst_109 = arith.constant dense<0.000000e+00> : vector<8x8xf32>
      %174 = tpu.matmul %170, %173, %cst_109 {dimension_numbers = #tpu.dot_dimension_numbers<[1], [0], [0], [1], [0, 0, 1, 1], [], []>} : vector<8x8xbf16>, vector<8x8xbf16>, vector<8x8xf32> -> vector<8x8xf32>
      %175 = tpu.reciprocal %169 {approx = true} : vector<8x1xf32> -> vector<8x1xf32>
      %176 = vector.broadcast %175 : vector<8x1xf32> to vector<8x8xf32>
      %177 = arith.mulf %174, %176 : vector<8x8xf32>
      %178 = arith.truncf %177 : vector<8x8xf32> to vector<8x8xbf16>
      %179 = arith.index_cast %arg29 : i32 to index
      %c0_110 = arith.constant 0 : index
      %c0_111 = arith.constant 0 : index
      %180 = vector.load %arg26[%179, %c0_110, %c0_111] : memref<4x8x8xbf16, #tpu.memory_space<vmem>>, vector<1x8x8xbf16>
      %181 = vector.shape_cast %180 : vector<1x8x8xbf16> to vector<8x8xbf16>
      %182 = vector.shape_cast %178 : vector<8x8xbf16> to vector<1x8x8xbf16>
      tpu.vector_store %arg26[%179, %c0_110, %c0_111], %182 {strides = array<i32>} : memref<4x8x8xbf16, #tpu.memory_space<vmem>>, vector<1x8x8xbf16>,
    }
    %c4_i32_33 = arith.constant 4 : i32
    %c0_34 = arith.constant 0 : index
    %c0_35 = arith.constant 0 : index
    %c0_36 = arith.constant 0 : index
    %61 = vector.load %arg26[%c0_34, %c0_35, %c0_36] : memref<4x8x8xbf16, #tpu.memory_space<vmem>>, vector<1x8x8xbf16>
    %62 = vector.shape_cast %61 : vector<1x8x8xbf16> to vector<8x8xbf16>
    %c0_37 = arith.constant 0 : index
    %c0_38 = arith.constant 0 : index
    %63 = vector.load %arg27[%c0_37, %c0_38] : memref<8x32xbf16, #tpu.memory_space<vmem>>, vector<8x8xbf16>
    tpu.vector_store %arg27[%c0_37, %c0_38], %62 {strides = array<i32>} : memref<8x32xbf16, #tpu.memory_space<vmem>>, vector<8x8xbf16>,
    %c1_39 = arith.constant 1 : index
    %c0_40 = arith.constant 0 : index
    %c0_41 = arith.constant 0 : index
    %64 = vector.load %arg26[%c1_39, %c0_40, %c0_41] : memref<4x8x8xbf16, #tpu.memory_space<vmem>>, vector<1x8x8xbf16>
    %65 = vector.shape_cast %64 : vector<1x8x8xbf16> to vector<8x8xbf16>
    %c0_42 = arith.constant 0 : index
    %c8 = arith.constant 8 : index
    %66 = vector.load %arg27[%c0_42, %c8] : memref<8x32xbf16, #tpu.memory_space<vmem>>, vector<8x8xbf16>
    tpu.vector_store %arg27[%c0_42, %c8], %65 {strides = array<i32>} : memref<8x32xbf16, #tpu.memory_space<vmem>>, vector<8x8xbf16>,
    %c2_43 = arith.constant 2 : index
    %c0_44 = arith.constant 0 : index
    %c0_45 = arith.constant 0 : index
    %67 = vector.load %arg26[%c2_43, %c0_44, %c0_45] : memref<4x8x8xbf16, #tpu.memory_space<vmem>>, vector<1x8x8xbf16>
    %68 = vector.shape_cast %67 : vector<1x8x8xbf16> to vector<8x8xbf16>
    %c0_46 = arith.constant 0 : index
    %c16 = arith.constant 16 : index
    %69 = vector.load %arg27[%c0_46, %c16] : memref<8x32xbf16, #tpu.memory_space<vmem>>, vector<8x8xbf16>
    tpu.vector_store %arg27[%c0_46, %c16], %68 {strides = array<i32>} : memref<8x32xbf16, #tpu.memory_space<vmem>>, vector<8x8xbf16>,
    %c3_47 = arith.constant 3 : index
    %c0_48 = arith.constant 0 : index
    %c0_49 = arith.constant 0 : index
    %70 = vector.load %arg26[%c3_47, %c0_48, %c0_49] : memref<4x8x8xbf16, #tpu.memory_space<vmem>>, vector<1x8x8xbf16>
    %71 = vector.shape_cast %70 : vector<1x8x8xbf16> to vector<8x8xbf16>
    %c0_50 = arith.constant 0 : index
    %c24 = arith.constant 24 : index
    %72 = vector.load %arg27[%c0_50, %c24] : memref<8x32xbf16, #tpu.memory_space<vmem>>, vector<8x8xbf16>
    tpu.vector_store %arg27[%c0_50, %c24], %71 {strides = array<i32>} : memref<8x32xbf16, #tpu.memory_space<vmem>>, vector<8x8xbf16>,
    %c0_51 = arith.constant 0 : index
    %c0_52 = arith.constant 0 : index
    %73 = vector.load %arg27[%c0_51, %c0_52] : memref<8x32xbf16, #tpu.memory_space<vmem>>, vector<8x32xbf16>
    %c0_53 = arith.constant 0 : index
    %c0_54 = arith.constant 0 : index
    %74 = vector.load %arg13[%c0_53, %c0_54] : memref<32x32xbf16, #tpu.memory_space<vmem>>, vector<32x32xbf16>
    %cst_55 = arith.constant dense<0.000000e+00> : vector<8x32xf32>
    %75 = tpu.matmul %73, %74, %cst_55 {dimension_numbers = #tpu.dot_dimension_numbers<[1], [0], [0], [1], [0, 0, 1, 1], [], []>} : vector<8x32xbf16>, vector<32x32xbf16>, vector<8x32xf32> -> vector<8x32xf32>
    %c0_56 = arith.constant 0 : index
    %c0_57 = arith.constant 0 : index
    %76 = vector.load %arg14[%c0_56, %c0_57] : memref<1x32xf32, #tpu.memory_space<vmem>>, vector<1x32xf32>
    %77 = vector.broadcast %76 : vector<1x32xf32> to vector<8x32xf32>
    %78 = arith.addf %75, %77 : vector<8x32xf32>
    %79 = arith.addf %4, %78 : vector<8x32xf32>
    %c0_58 = arith.constant 0 : index
    %c0_59 = arith.constant 0 : index
    %80 = vector.load %arg28[%c0_58, %c0_59] : memref<8x32xf32, #tpu.memory_space<vmem>>, vector<8x32xf32>
    tpu.vector_store %arg28[%c0_58, %c0_59], %79 {strides = array<i32>} : memref<8x32xf32, #tpu.memory_space<vmem>>, vector<8x32xf32>,
    %c0_60 = arith.constant 0 : index
    %c0_61 = arith.constant 0 : index
    %81 = tpu.strided_load %arg28[%c0_60, %c0_61] {strides = array<i32: 2, 1>} : memref<8x32xf32, #tpu.memory_space<vmem>>, vector<4x32xf32>
    %c1_62 = arith.constant 1 : index
    %c0_63 = arith.constant 0 : index
    %82 = tpu.strided_load %arg28[%c1_62, %c0_63] {strides = array<i32: 2, 1>} : memref<8x32xf32, #tpu.memory_space<vmem>>, vector<4x32xf32>
    %c0_64 = arith.constant 0 : index
    %c0_65 = arith.constant 0 : index
    %83 = vector.load %arg15[%c0_64, %c0_65] : memref<1x32xf32, #tpu.memory_space<vmem>>, vector<1x32xf32>
    %c0_66 = arith.constant 0 : index
    %c0_67 = arith.constant 0 : index
    %84 = vector.load %arg16[%c0_66, %c0_67] : memref<1x32xf32, #tpu.memory_space<vmem>>, vector<1x32xf32>
    %cst_68 = arith.constant dense<0.000000e+00> : vector<4xf32>
    %85 = vector.multi_reduction <add>, %81, %cst_68 [1] : vector<4x32xf32> to vector<4xf32>
    %86 = vector.shape_cast %85 : vector<4xf32> to vector<4x1xf32>
    %cst_69 = arith.constant 3.200000e+01 : f32
    %87 = vector.broadcast %cst_69 : f32 to vector<4x1xf32>
    %88 = arith.divf %86, %87 : vector<4x1xf32>
    %89 = vector.broadcast %88 : vector<4x1xf32> to vector<4x32xf32>
    %90 = arith.subf %81, %89 : vector<4x32xf32>
    %91 = arith.mulf %90, %90 : vector<4x32xf32>
    %cst_70 = arith.constant dense<0.000000e+00> : vector<4xf32>
    %92 = vector.multi_reduction <add>, %91, %cst_70 [1] : vector<4x32xf32> to vector<4xf32>
    %93 = vector.shape_cast %92 : vector<4xf32> to vector<4x1xf32>
    %cst_71 = arith.constant 0.0322580636 : f32
    %94 = vector.broadcast %cst_71 : f32 to vector<4x1xf32>
    %95 = arith.mulf %93, %94 : vector<4x1xf32>
    %96 = math.sqrt %95 : vector<4x1xf32>
    %cst_72 = arith.constant 9.99999997E-7 : f32
    %97 = vector.broadcast %cst_72 : f32 to vector<4x1xf32>
    %98 = arith.addf %96, %97 : vector<4x1xf32>
    %99 = tpu.reciprocal %98 : vector<4x1xf32> -> vector<4x1xf32>
    %100 = vector.broadcast %83 : vector<1x32xf32> to vector<4x32xf32>
    %101 = vector.broadcast %99 : vector<4x1xf32> to vector<4x32xf32>
    %102 = arith.mulf %100, %101 : vector<4x32xf32>
    %103 = arith.mulf %90, %102 : vector<4x32xf32>
    %104 = vector.broadcast %84 : vector<1x32xf32> to vector<4x32xf32>
    %105 = arith.addf %103, %104 : vector<4x32xf32>
    %106 = arith.truncf %105 : vector<4x32xf32> to vector<4x32xbf16>
    %c0_73 = arith.constant 0 : index
    %c0_74 = arith.constant 0 : index
    %107 = vector.load %arg15[%c0_73, %c0_74] : memref<1x32xf32, #tpu.memory_space<vmem>>, vector<1x32xf32>
    %c0_75 = arith.constant 0 : index
    %c0_76 = arith.constant 0 : index
    %108 = vector.load %arg16[%c0_75, %c0_76] : memref<1x32xf32, #tpu.memory_space<vmem>>, vector<1x32xf32>
    %cst_77 = arith.constant dense<0.000000e+00> : vector<4xf32>
    %109 = vector.multi_reduction <add>, %82, %cst_77 [1] : vector<4x32xf32> to vector<4xf32>
    %110 = vector.shape_cast %109 : vector<4xf32> to vector<4x1xf32>
    %cst_78 = arith.constant 3.200000e+01 : f32
    %111 = vector.broadcast %cst_78 : f32 to vector<4x1xf32>
    %112 = arith.divf %110, %111 : vector<4x1xf32>
    %113 = vector.broadcast %112 : vector<4x1xf32> to vector<4x32xf32>
    %114 = arith.subf %82, %113 : vector<4x32xf32>
    %115 = arith.mulf %114, %114 : vector<4x32xf32>
    %cst_79 = arith.constant dense<0.000000e+00> : vector<4xf32>
    %116 = vector.multi_reduction <add>, %115, %cst_79 [1] : vector<4x32xf32> to vector<4xf32>
    %117 = vector.shape_cast %116 : vector<4xf32> to vector<4x1xf32>
    %cst_80 = arith.constant 0.0322580636 : f32
    %118 = vector.broadcast %cst_80 : f32 to vector<4x1xf32>
    %119 = arith.mulf %117, %118 : vector<4x1xf32>
    %120 = math.sqrt %119 : vector<4x1xf32>
    %cst_81 = arith.constant 9.99999997E-7 : f32
    %121 = vector.broadcast %cst_81 : f32 to vector<4x1xf32>
    %122 = arith.addf %120, %121 : vector<4x1xf32>
    %123 = tpu.reciprocal %122 : vector<4x1xf32> -> vector<4x1xf32>
    %124 = vector.broadcast %107 : vector<1x32xf32> to vector<4x32xf32>
    %125 = vector.broadcast %123 : vector<4x1xf32> to vector<4x32xf32>
    %126 = arith.mulf %124, %125 : vector<4x32xf32>
    %127 = arith.mulf %114, %126 : vector<4x32xf32>
    %128 = vector.broadcast %108 : vector<1x32xf32> to vector<4x32xf32>
    %129 = arith.addf %127, %128 : vector<4x32xf32>
    %130 = arith.truncf %129 : vector<4x32xf32> to vector<4x32xbf16>
    %c0_82 = arith.constant 0 : index
    %c0_83 = arith.constant 0 : index
    %131 = vector.load %arg17[%c0_82, %c0_83] : memref<32x64xbf16, #tpu.memory_space<vmem>>, vector<32x64xbf16>
    %cst_84 = arith.constant dense<0.000000e+00> : vector<4x64xf32>
    %132 = tpu.matmul %106, %131, %cst_84 {dimension_numbers = #tpu.dot_dimension_numbers<[1], [0], [0], [1], [0, 0, 1, 1], [], []>} : vector<4x32xbf16>, vector<32x64xbf16>, vector<4x64xf32> -> vector<4x64xf32>
    %c0_85 = arith.constant 0 : index
    %c0_86 = arith.constant 0 : index
    %133 = vector.load %arg18[%c0_85, %c0_86] : memref<32x64xbf16, #tpu.memory_space<vmem>>, vector<32x64xbf16>
    %cst_87 = arith.constant dense<0.000000e+00> : vector<4x64xf32>
    %134 = tpu.matmul %130, %133, %cst_87 {dimension_numbers = #tpu.dot_dimension_numbers<[1], [0], [0], [1], [0, 0, 1, 1], [], []>} : vector<4x32xbf16>, vector<32x64xbf16>, vector<4x64xf32> -> vector<4x64xf32>
    %135 = arith.addf %132, %134 : vector<4x64xf32>
    %c0_88 = arith.constant 0 : index
    %c0_89 = arith.constant 0 : index
    %136 = vector.load %arg19[%c0_88, %c0_89] : memref<1x64xf32, #tpu.memory_space<vmem>>, vector<1x64xf32>
    %137 = vector.broadcast %136 : vector<1x64xf32> to vector<4x64xf32>
    %138 = arith.addf %135, %137 : vector<4x64xf32>
    %cst_90 = arith.constant 0.000000e+00 : f32
    %139 = vector.broadcast %cst_90 : f32 to vector<4x64xf32>
    %140 = arith.maximumf %138, %139 : vector<4x64xf32>
    %141 = arith.truncf %140 : vector<4x64xf32> to vector<4x64xbf16>
    %c0_91 = arith.constant 0 : index
    %c0_92 = arith.constant 0 : index
    %142 = vector.load %arg20[%c0_91, %c0_92] : memref<64x32xbf16, #tpu.memory_space<vmem>>, vector<64x32xbf16>
    %cst_93 = arith.constant dense<0.000000e+00> : vector<4x32xf32>
    %143 = tpu.matmul %141, %142, %cst_93 {dimension_numbers = #tpu.dot_dimension_numbers<[1], [0], [0], [1], [0, 0, 1, 1], [], []>} : vector<4x64xbf16>, vector<64x32xbf16>, vector<4x32xf32> -> vector<4x32xf32>
    %c0_94 = arith.constant 0 : index
    %c0_95 = arith.constant 0 : index
    %144 = vector.load %arg21[%c0_94, %c0_95] : memref<1x32xf32, #tpu.memory_space<vmem>>, vector<1x32xf32>
    %145 = vector.broadcast %144 : vector<1x32xf32> to vector<4x32xf32>
    %146 = arith.addf %143, %145 : vector<4x32xf32>
    %147 = arith.addf %81, %82 : vector<4x32xf32>
    %cst_96 = arith.constant 5.000000e-01 : f32
    %148 = vector.broadcast %cst_96 : f32 to vector<4x32xf32>
    %149 = arith.mulf %147, %148 : vector<4x32xf32>
    %150 = arith.addf %149, %146 : vector<4x32xf32>
    %c0_97 = arith.constant 0 : index
    %c0_98 = arith.constant 0 : index
    %c0_99 = arith.constant 0 : index
    %151 = vector.load %arg22[%c0_97, %c0_98, %c0_99] : memref<1x4x32xf32, #tpu.memory_space<vmem>>, vector<1x4x32xf32>
    %152 = vector.shape_cast %151 : vector<1x4x32xf32> to vector<4x32xf32>
    %153 = vector.shape_cast %150 : vector<4x32xf32> to vector<1x4x32xf32>
    tpu.vector_store %arg22[%c0_97, %c0_98, %c0_99], %153 {strides = array<i32>} : memref<1x4x32xf32, #tpu.memory_space<vmem>>, vector<1x4x32xf32>,
    return
  }
  func.func @transform_0(%arg0: i32, %arg1: i32) -> (i32, i32, i32) {
    %c0_i32 = arith.constant 0 : i32
    %c0_i32_0 = arith.constant 0 : i32
    return %arg0, %arg1, %c0_i32 : i32, i32, i32
  }
  func.func @transform_1(%arg0: i32, %arg1: i32) -> (i32, i32, i32) {
    %c0_i32 = arith.constant 0 : i32
    %c0_i32_0 = arith.constant 0 : i32
    %c0_i32_1 = arith.constant 0 : i32
    return %arg0, %c0_i32, %c0_i32_0 : i32, i32, i32
  }
  func.func @transform_2(%arg0: i32, %arg1: i32) -> (i32, i32, i32) {
    %c0_i32 = arith.constant 0 : i32
    %c0_i32_0 = arith.constant 0 : i32
    %c0_i32_1 = arith.constant 0 : i32
    return %arg0, %c0_i32, %c0_i32_0 : i32, i32, i32
  }
  func.func @transform_3(%arg0: i32, %arg1: i32) -> (i32, i32) {
    %c0_i32 = arith.constant 0 : i32
    %c0_i32_0 = arith.constant 0 : i32
    %c0_i32_1 = arith.constant 0 : i32
    return %c0_i32, %c0_i32_0 : i32, i32
  }
  func.func @transform_4(%arg0: i32, %arg1: i32) -> (i32, i32) {
    %c0_i32 = arith.constant 0 : i32
    %c0_i32_0 = arith.constant 0 : i32
    %c0_i32_1 = arith.constant 0 : i32
    return %c0_i32, %c0_i32_0 : i32, i32
  }
  func.func @transform_5(%arg0: i32, %arg1: i32) -> (i32, i32) {
    %c0_i32 = arith.constant 0 : i32
    %c0_i32_0 = arith.constant 0 : i32
    %c0_i32_1 = arith.constant 0 : i32
    return %c0_i32, %c0_i32_0 : i32, i32
  }
  func.func @transform_6(%arg0: i32, %arg1: i32) -> (i32, i32) {
    %c0_i32 = arith.constant 0 : i32
    %c0_i32_0 = arith.constant 0 : i32
    %c0_i32_1 = arith.constant 0 : i32
    return %c0_i32, %c0_i32_0 : i32, i32
  }
  func.func @transform_7(%arg0: i32, %arg1: i32) -> (i32, i32) {
    %c0_i32 = arith.constant 0 : i32
    %c0_i32_0 = arith.constant 0 : i32
    %c0_i32_1 = arith.constant 0 : i32
    return %c0_i32, %c0_i32_0 : i32, i32
  }
  func.func @transform_8(%arg0: i32, %arg1: i32) -> (i32, i32) {
    %c0_i32 = arith.constant 0 : i32
    %c0_i32_0 = arith.constant 0 : i32
    %c0_i32_1 = arith.constant 0 : i32
    return %c0_i32, %c0_i32_0 : i32, i32
  }
  func.func @transform_9(%arg0: i32, %arg1: i32) -> (i32, i32) {
    %c0_i32 = arith.constant 0 : i32
    %c0_i32_0 = arith.constant 0 : i32
    %c0_i32_1 = arith.constant 0 : i32
    return %c0_i32, %c0_i32_0 : i32, i32
  }
  func.func @transform_10(%arg0: i32, %arg1: i32) -> (i32, i32) {
    %c0_i32 = arith.constant 0 : i32
    %c0_i32_0 = arith.constant 0 : i32
    %c0_i32_1 = arith.constant 0 : i32
    return %c0_i32, %c0_i32_0 : i32, i32
  }
  func.func @transform_11(%arg0: i32, %arg1: i32) -> (i32, i32) {
    %c0_i32 = arith.constant 0 : i32
    %c0_i32_0 = arith.constant 0 : i32
    %c0_i32_1 = arith.constant 0 : i32
    return %c0_i32, %c0_i32_0 : i32, i32
  }
  func.func @transform_12(%arg0: i32, %arg1: i32) -> (i32, i32) {
    %c0_i32 = arith.constant 0 : i32
    %c0_i32_0 = arith.constant 0 : i32
    %c0_i32_1 = arith.constant 0 : i32
    return %c0_i32, %c0_i32_0 : i32, i32
  }
  func.func @transform_13(%arg0: i32, %arg1: i32) -> (i32, i32) {
    %c0_i32 = arith.constant 0 : i32
    %c0_i32_0 = arith.constant 0 : i32
    %c0_i32_1 = arith.constant 0 : i32
    return %c0_i32, %c0_i32_0 : i32, i32
  }
  func.func @transform_14(%arg0: i32, %arg1: i32) -> (i32, i32) {
    %c0_i32 = arith.constant 0 : i32
    %c0_i32_0 = arith.constant 0 : i32
    %c0_i32_1 = arith.constant 0 : i32
    return %c0_i32, %c0_i32_0 : i32, i32
  }
  func.func @transform_15(%arg0: i32, %arg1: i32) -> (i32, i32) {
    %c0_i32 = arith.constant 0 : i32
    %c0_i32_0 = arith.constant 0 : i32
    %c0_i32_1 = arith.constant 0 : i32
    return %c0_i32, %c0_i32_0 : i32, i32
  }
  func.func @transform_16(%arg0: i32, %arg1: i32) -> (i32, i32) {
    %c0_i32 = arith.constant 0 : i32
    %c0_i32_0 = arith.constant 0 : i32
    %c0_i32_1 = arith.constant 0 : i32
    return %c0_i32, %c0_i32_0 : i32, i32
  }
  func.func @transform_17(%arg0: i32, %arg1: i32) -> (i32, i32) {
    %c0_i32 = arith.constant 0 : i32
    %c0_i32_0 = arith.constant 0 : i32
    %c0_i32_1 = arith.constant 0 : i32
    return %c0_i32, %c0_i32_0 : i32, i32
  }
  func.func @transform_18(%arg0: i32, %arg1: i32) -> (i32, i32) {
    %c0_i32 = arith.constant 0 : i32
    %c0_i32_0 = arith.constant 0 : i32
    %c0_i32_1 = arith.constant 0 : i32
    return %c0_i32, %c0_i32_0 : i32, i32
  }
  func.func @transform_19(%arg0: i32, %arg1: i32) -> (i32, i32) {
    %c0_i32 = arith.constant 0 : i32
    %c0_i32_0 = arith.constant 0 : i32
    %c0_i32_1 = arith.constant 0 : i32
    return %c0_i32, %c0_i32_0 : i32, i32
  }
  func.func @transform_20(%arg0: i32, %arg1: i32) -> (i32, i32, i32) {
    %c0_i32 = arith.constant 0 : i32
    %c0_i32_0 = arith.constant 0 : i32
    return %arg0, %arg1, %c0_i32 : i32, i32, i32
  }
}

</mosaic_0001>

<bundles_post_ra>
// kernel: tpu_custom_call.1
= control target key start
LH: loop header
LB: loop body
LE: loop exit
PB: predicated region body
PF: predicated region fallthrough
CT: control target
= control target key end

     0   :  { %s4189_s0 = inlined_call_operand.hbm [shape: f32[2,8,32], index: 0, kind: input, shape index: {}]   ;;  %s4190_s1 = inlined_call_operand.hbm [shape: bf16[2,8,32], index: 1, kind: input, shape index: {}]   ;;  %s4191_s2 = inlined_call_operand.hbm [shape: f32[2,1,8], index: 2, kind: input, shape index: {}]   ;;  %s4192_s3 = inlined_call_operand.hbm [shape: f32[1,32], index: 3, kind: input, shape index: {}]   ;;  %s4193_s4 = inlined_call_operand.hbm [shape: f32[1,32], index: 4, kind: input, shape index: {}]   ;;  %s4194_s5 = inlined_call_operand.hbm [shape: bf16[32,32], index: 5, kind: input, shape index: {}]   ;;  %s4195_s6 = inlined_call_operand.hbm [shape: f32[1,32], index: 6, kind: input, shape index: {}]   ;;  %s4196_s7 = inlined_call_operand.hbm [shape: bf16[32,32], index: 7, kind: input, shape index: {}]   ;;  %s4197_s8 = inlined_call_operand.hbm [shape: f32[1,32], index: 8, kind: input, shape index: {}]   ;;  %s4198_s9 = inlined_call_operand.hbm [shape: bf16[32,32], index: 9, kind: input, shape index: {}]   ;;  %s4199_s10 = inlined_call_operand.hbm [shape: f32[1,32], index: 10, kind: input, shape index: {}]   ;;  %s4200_s11 = inlined_call_operand.hbm [shape: bf16[32,32], index: 11, kind: input, shape index: {}]   ;;  %s4201_s12 = inlined_call_operand.hbm [shape: f32[1,32], index: 12, kind: input, shape index: {}]   ;;  %s4202_s13 = inlined_call_operand.hbm [shape: f32[1,32], index: 13, kind: input, shape index: {}]   ;;  %s4203_s14 = inlined_call_operand.hbm [shape: f32[1,32], index: 14, kind: input, shape index: {}]   ;;  %s4204_s15 = inlined_call_operand.hbm [shape: bf16[32,64], index: 15, kind: input, shape index: {}]   ;;  %s4205_s16 = inlined_call_operand.hbm [shape: bf16[32,64], index: 16, kind: input, shape index: {}]   ;;  %s4206_s17 = inlined_call_operand.hbm [shape: f32[1,64], index: 17, kind: input, shape index: {}]   ;;  %s4207_s18 = inlined_call_operand.hbm [shape: bf16[64,32], index: 18, kind: input, shape index: {}]   ;;  %s4208_s19 = inlined_call_operand.hbm [shape: f32[1,32], index: 19, kind: input, shape index: {}]   ;;  %s4209_s20 = inlined_call_operand.hbm [shape: f32[2,4,32], index: 20, kind: output, shape index: {}]  }
   0x1   :  { %4248 = sst [smem:[#allocation57_spill]] %s4189_s0 }
   0x2   :  { %4249 = sst [smem:[#allocation58_spill]] %s4190_s1 }
   0x3   :  { %4250 = sst [smem:[#allocation59_spill]] %s4191_s2 }
   0x4   :  { %4251 = sst [smem:[#allocation60_spill]] %s4192_s3 }
   0x5   :  { %4252 = sst [smem:[#allocation61_spill]] %s4193_s4 }
   0x6   :  { %4253 = sst [smem:[#allocation62_spill]] %s4194_s5 }
   0x7   :  { %4254 = sst [smem:[#allocation63_spill]] %s4195_s6 }
   0x8   :  { %4255 = sst [smem:[#allocation64_spill]] %s4196_s7 }
   0x9   :  { %4256 = sst [smem:[#allocation65_spill]] %s4197_s8 }
   0xa   :  { %4257 = sst [smem:[#allocation66_spill]] %s4198_s9 }
   0xb   :  { %4258 = sst [smem:[#allocation67_spill]] %s4199_s10 }
   0xc   :  { %4259 = sst [smem:[#allocation68_spill]] %s4200_s11 }
   0xd   :  { %4260 = sst [smem:[#allocation69_spill]] %s4201_s12 }
   0xe   :  { %4261 = sst [smem:[#allocation70_spill]] %s4202_s13 }
   0xf   :  { %4262 = sst [smem:[#allocation71_spill]] %s4203_s14 }
  0x10   :  { %4263 = sst [smem:[#allocation72_spill]] %s4204_s15 }
  0x11   :  { %4264 = sst [smem:[#allocation73_spill]] %s4205_s16 }
  0x12   :  { %4265 = sst [smem:[#allocation74_spill]] %s4206_s17 }
  0x13   :  { %4266 = sst [smem:[#allocation75_spill]] %s4207_s18 }
  0x14   :  { %4267 = sst [smem:[#allocation76_spill]] %s4208_s19 }
  0x15   :  { %4268 = sst [smem:[#allocation77_spill]] %s4209_s20 }
  0x16   :  { %25 = vsyncpa [#allocation9], 0 }
  0x17   :  { %27 = vsyncpa [#allocation9 + $0x1], 0 }
  0x18   :  { %28 = vsyncpa [#allocation12], 0 }
  0x19   :  { %30 = vsyncpa [#allocation12 + $0x1], 0 }
  0x1a   :  { %31 = vsyncpa [#allocation15], 0 }
  0x1b   :  { %32 = vsyncpa [#allocation18], 0 }
  0x1c   :  { %33 = vsyncpa [#allocation21], 0 }
  0x1d   :  { %34 = vsyncpa [#allocation24], 0 }
  0x1e   :  { %35 = vsyncpa [#allocation27], 0 }
  0x1f   :  { %36 = vsyncpa [#allocation30], 0 }
  0x20   :  { %37 = vsyncpa [#allocation33], 0 }
  0x21   :  { %38 = vsyncpa [#allocation36], 0 }
  0x22   :  { %39 = vsyncpa [#allocation39], 0 }
  0x23   :  { %40 = vsyncpa [#allocation10], 0 }
  0x24   :  { %42 = vsyncpa [#allocation10 + $0x1], 0  ;;  %s3451_s1 = smov 0   ;;  %s3453_s22 = smov 0  }
  0x25   :  { %s3455_s23 = smov 0   ;;  %s3457_s24 = smov 0  }
  0x26   :  { %s3459_s2 = smov 0   ;;  %s3461_s25 = smov 0  }
  0x27 LB: > { %4269 = sst [smem:[#allocation53_spill]] %s3299_s24  ;;  %s3482_s3 = sadd.s32 4294967295, %s3307_s25   ;;  %s3307_s25 = sphi %s3461_s25, %s48_s25   ;;  %s3303_s2 = sphi %s3459_s2, %s4342_s2   ;;  %s3299_s24 = sphi %s3457_s24, %s4341_s24   ;;  %s3295_s23 = sphi %s3455_s23, %s4340_s23   ;;  %s3291_s22 = sphi %s3453_s22, %s4339_s22   ;;  %s3287_s1 = sphi %s3451_s1, %s4338_s1  }
  0x28   : > { %p2121_p0 = scmp.ge.s32.totalorder %s3307_s25, 1  ;;  %p4220_p1 = scmp.eq.s32.totalorder %s3482_s3, 0 }
  0x29   : > { %p530_p2 = scmp.lt.s32.totalorder %s3307_s25, 3  ;;  %s3313_s27 = smov [#allocation14]  }
  0x2a   : > { %s543_s28 = sshll.u32 %s3313_s27, 4  ;;  %s3314_s4 = smov [#allocation17]   ;;  %s544_s28 = int_to_ptr.vmem [resolvable:$true] %s543_s28 }
  0x2b   : > { %p3487_p3 = pnand %p2121_p0, %p530_p2  ;;  %s564_s29 = sshll.u32 %s3314_s4, 4  ;;  %s3500_s29 = int_to_ptr.vmem [resolvable:$true] %s564_s29 }
  0x2c   : > { %s3315_s0 = smov [#allocation20]   ;;  %s4273_s27 = sld [smem:[#allocation60_spill]] }
  0x2d   : > { %s4270_s26 = scalar_select %p3487_p3, 1, 0 }
  0x2e   : > { %p2392_p5 = pneg %p3487_p3  ;;  %s3502_s21 = sshll.u32 %s3315_s0, 4  ;;  %s589_s21 = int_to_ptr.vmem [resolvable:$true] %s3502_s21 }
  0x2f   : > { %4271 = sst [smem:[#allocation54_spill]] %s4270_s26 }
  0x30   : > { %p3496_p6 = pnand %p2392_p5, %p4220_p1 }
  0x32   : > { %s4272_s30 = scalar_select %p3496_p6, 1, 0 }
  0x33   : > { %s2615_s19 = scalar_lea.hbm %s4273_s27, 16  ;;  %p3512_p8 = pneg %p3496_p6 }
  0x34   : > { %p2616_p7 = scmp.ne.s32.totalorder %s4273_s27, %s2615_s19  ;;  %p2622_p11 = scmp.lt.u32.totalorder %s2615_s19, %s4273_s27 }
  0x35   : > { %s4274_s4 = scalar_select %p3512_p8, 1, 0 }
  0x36   : > { %p2618_p9 = pnand %p3512_p8, %p2616_p7 }
  0x38   : > { %p2619_p10 = pneg %p2618_p9 }
  0x3a   : > { %p2624_p12 = pnand %p2622_p11, %p2619_p10 }
  0x3c   : > { %2627 = shalt.err (!%p2624_p12)
}
  0x3d   : > { %s2628_s20 = scalar_lea.vmem %s544_s28, 16  ;;  %s2635_s18 = scalar_lea.vmem %s544_s28, 32 }
  0x3e   : > { %p2629_p13 = scmp.ne.s32.totalorder %s544_s28, %s2628_s20  ;;  %p2636_p5 = scmp.lt.s32.totalorder %s544_s28, %s544_s28 }
  0x3f   : > { %p2637_p4 = scmp.lt.s32.totalorder %s2635_s18, %s2628_s20 }
  0x40   : > { %p2631_p0 = pnand %p2629_p13, %p3512_p8 }
  0x41   : > { %p2638_p1 = por %p2637_p4, %p2636_p5 }
  0x42   : > { %p2632_p2 = pneg %p2631_p0 }
  0x44   : > { %p2639_p3 = pnand %p2638_p1, %p2632_p2 }
  0x46   : > { %2642 = shalt.err (!%p2639_p3)
}
  0x47   : > { %2395 = dma.hbm_to_vmem [thread:$0]  (!%p3496_p6), %s4273_s27, 16, %s544_s28, [#allocation15]  }
  0x48   : > { %s4275_s5 = sld [smem:[#allocation62_spill]] }
  0x4e   : > { %s2643_s0 = scalar_lea.hbm %s4275_s5, 256 }
  0x4f   : > { %p2644_p7 = scmp.ne.s32.totalorder %s4275_s5, %s2643_s0  ;;  %p2650_p1 = scmp.lt.u32.totalorder %s2643_s0, %s4275_s5 }
  0x51   : > { %p2646_p9 = pnand %p2644_p7, %p3512_p8 }
  0x53   : > { %p2647_p4 = pneg %p2646_p9 }
  0x55   : > { %p2652_p3 = pnand %p2650_p1, %p2647_p4 }
  0x57   : > { %2655 = shalt.err (!%p2652_p3)
}
  0x58   : > { %s2656_s28 = scalar_lea.vmem %s3500_s29, 256  ;;  %p2664_p13 = scmp.lt.s32.totalorder %s3500_s29, %s3500_s29 }
  0x59   : > { %p2657_p10 = scmp.ne.s32.totalorder %s3500_s29, %s2656_s28  ;;  %p2665_p0 = scmp.lt.s32.totalorder %s2656_s28, %s2656_s28 }
  0x5b   : > { %p2659_p11 = pnand %p2657_p10, %p3512_p8  ;;  %p2666_p2 = por %p2665_p0, %p2664_p13 }
  0x5d   : > { %p2660_p12 = pneg %p2659_p11 }
  0x5f   : > { %p2667_p5 = pnand %p2666_p2, %p2660_p12 }
  0x61   : > { %2670 = shalt.err (!%p2667_p5)
}
  0x62   : > { %s4226_s12 = smov 64   ;;  %s4228_s14 = smov 4  }
  0x63   : > { %2401 = dma.hbm_to_vmem [thread:$0]  (!%p3496_p6), %s4275_s5, 256, %s3500_s29, [#allocation18], %s4226_s12, %s4226_s12, %s4228_s14  }
  0x64   : > { %s4276_s7 = sld [smem:[#allocation64_spill]] }
  0x6a   : > { %s2671_s0 = scalar_lea.hbm %s4276_s7, 256 }
  0x6b   : > { %p2672_p7 = scmp.ne.s32.totalorder %s4276_s7, %s2671_s0  ;;  %p2678_p1 = scmp.lt.u32.totalorder %s2671_s0, %s4276_s7 }
  0x6d   : > { %p2674_p9 = pnand %p2672_p7, %p3512_p8 }
  0x6f   : > { %p2675_p4 = pneg %p2674_p9 }
  0x71   : > { %p2680_p3 = pnand %p2678_p1, %p2675_p4 }
  0x73   : > { %2683 = shalt.err (!%p2680_p3)
}
  0x74   : > { %s2684_s24 = scalar_lea.vmem %s589_s21, 256  ;;  %p2692_p13 = scmp.lt.s32.totalorder %s589_s21, %s589_s21 }
  0x75   : > { %p2685_p10 = scmp.ne.s32.totalorder %s589_s21, %s2684_s24  ;;  %p2693_p0 = scmp.lt.s32.totalorder %s2684_s24, %s2684_s24 }
  0x77   : > { %p2687_p11 = pnand %p2685_p10, %p3512_p8  ;;  %p2694_p2 = por %p2693_p0, %p2692_p13 }
  0x79   : > { %p2688_p12 = pneg %p2687_p11 }
  0x7b   : > { %p2695_p5 = pnand %p2694_p2, %p2688_p12 }
  0x7d   : > { %2698 = shalt.err (!%p2695_p5)
}
  0x7e   : > { %2407 = dma.hbm_to_vmem [thread:$0]  (!%p3496_p6), %s4276_s7, 256, %s589_s21, [#allocation21], %s4226_s12, %s4226_s12, %s4228_s14  }
  0x7f   : > { %s3318_s26 = smov [#allocation23]   ;;  %s3319_s19 = smov [#allocation26]  }
  0x80   : > { %s612_s16 = sshll.u32 %s3318_s26, 4  ;;  %s636_s0 = sshll.u32 %s3319_s19, 4  ;;  %s613_s16 = int_to_ptr.vmem [resolvable:$true] %s612_s16  ;;  %s637_s0 = int_to_ptr.vmem [resolvable:$true] %s636_s0 }
  0x81   : > { %s4277_s9 = sld [smem:[#allocation66_spill]] }
  0x87   : > { %s2699_s28 = scalar_lea.hbm %s4277_s9, 256 }
  0x88   : > { %p2700_p7 = scmp.ne.s32.totalorder %s4277_s9, %s2699_s28  ;;  %p2706_p1 = scmp.lt.u32.totalorder %s2699_s28, %s4277_s9 }
  0x8a   : > { %p2702_p9 = pnand %p2700_p7, %p3512_p8 }
  0x8c   : > { %p2703_p4 = pneg %p2702_p9 }
  0x8e   : > { %p2708_p3 = pnand %p2706_p1, %p2703_p4 }
  0x90   : > { %2711 = shalt.err (!%p2708_p3)
}
  0x91   : > { %s2712_s21 = scalar_lea.vmem %s613_s16, 256  ;;  %p2720_p13 = scmp.lt.s32.totalorder %s613_s16, %s613_s16 }
  0x92   : > { %p2713_p10 = scmp.ne.s32.totalorder %s613_s16, %s2712_s21  ;;  %p2721_p0 = scmp.lt.s32.totalorder %s2712_s21, %s2712_s21 }
  0x94   : > { %p2715_p11 = pnand %p2713_p10, %p3512_p8  ;;  %p2722_p2 = por %p2721_p0, %p2720_p13 }
  0x96   : > { %p2716_p12 = pneg %p2715_p11 }
  0x98   : > { %p2723_p5 = pnand %p2722_p2, %p2716_p12 }
  0x9a   : > { %2726 = shalt.err (!%p2723_p5)
}
  0x9b   : > { %2413 = dma.hbm_to_vmem [thread:$0]  (!%p3496_p6), %s4277_s9, 256, %s613_s16, [#allocation24], %s4226_s12, %s4226_s12, %s4228_s14  }
  0x9c   : > { %s4278_s11 = sld [smem:[#allocation68_spill]] }
  0xa2   : > { %s2727_s19 = scalar_lea.hbm %s4278_s11, 256 }
  0xa3   : > { %p2728_p7 = scmp.ne.s32.totalorder %s4278_s11, %s2727_s19  ;;  %p2734_p1 = scmp.lt.u32.totalorder %s2727_s19, %s4278_s11 }
  0xa5   : > { %p2730_p9 = pnand %p2728_p7, %p3512_p8 }
  0xa7   : > { %p2731_p4 = pneg %p2730_p9 }
  0xa9   : > { %p2736_p3 = pnand %p2734_p1, %p2731_p4 }
  0xab   : > { %2739 = shalt.err (!%p2736_p3)
}
  0xac   : > { %s2740_s29 = scalar_lea.vmem %s637_s0, 256  ;;  %p2748_p13 = scmp.lt.s32.totalorder %s637_s0, %s637_s0 }
  0xad   : > { %p2741_p10 = scmp.ne.s32.totalorder %s637_s0, %s2740_s29  ;;  %p2749_p0 = scmp.lt.s32.totalorder %s2740_s29, %s2740_s29 }
  0xaf   : > { %p2743_p11 = pnand %p2741_p10, %p3512_p8  ;;  %p2750_p2 = por %p2749_p0, %p2748_p13 }
  0xb1   : > { %p2744_p12 = pneg %p2743_p11 }
  0xb3   : > { %p2751_p5 = pnand %p2750_p2, %p2744_p12 }
  0xb5   : > { %2754 = shalt.err (!%p2751_p5)
}
  0xb6   : > { %2419 = dma.hbm_to_vmem [thread:$0]  (!%p3496_p6), %s4278_s11, 256, %s637_s0, [#allocation27], %s4226_s12, %s4226_s12, %s4228_s14  }
  0xb7   : > { %s3320_s5 = smov [#allocation29]   ;;  %s3321_s27 = smov [#allocation32]  }
  0xb8   : > { %s661_s10 = sshll.u32 %s3320_s5, 4  ;;  %s682_s26 = sshll.u32 %s3321_s27, 4  ;;  %s662_s10 = int_to_ptr.vmem [resolvable:$true] %s661_s10  ;;  %s683_s26 = int_to_ptr.vmem [resolvable:$true] %s682_s26 }
  0xb9   : > { %s4279_s13 = sld [smem:[#allocation70_spill]] }
  0xbf   : > { %s2755_s18 = scalar_lea.hbm %s4279_s13, 16 }
  0xc0   : > { %p2756_p7 = scmp.ne.s32.totalorder %s4279_s13, %s2755_s18  ;;  %p2762_p1 = scmp.lt.u32.totalorder %s2755_s18, %s4279_s13 }
  0xc2   : > { %p2758_p9 = pnand %p2756_p7, %p3512_p8 }
  0xc4   : > { %p2759_p4 = pneg %p2758_p9 }
  0xc6   : > { %p2764_p3 = pnand %p2762_p1, %p2759_p4 }
  0xc8   : > { %2767 = shalt.err (!%p2764_p3)
}
  0xc9   : > { %s2768_s0 = scalar_lea.vmem %s662_s10, 16  ;;  %s2775_s21 = scalar_lea.vmem %s662_s10, 32 }
  0xca   : > { %p2769_p10 = scmp.ne.s32.totalorder %s662_s10, %s2768_s0  ;;  %p2776_p13 = scmp.lt.s32.totalorder %s662_s10, %s662_s10 }
  0xcb   : > { %p2777_p0 = scmp.lt.s32.totalorder %s2775_s21, %s2768_s0 }
  0xcc   : > { %p2771_p11 = pnand %p2769_p10, %p3512_p8 }
  0xcd   : > { %p2778_p2 = por %p2777_p0, %p2776_p13 }
  0xce   : > { %p2772_p12 = pneg %p2771_p11 }
  0xd0   : > { %p2779_p5 = pnand %p2778_p2, %p2772_p12 }
  0xd2   : > { %2782 = shalt.err (!%p2779_p5)
}
  0xd3   : > { %2425 = dma.hbm_to_vmem [thread:$0]  (!%p3496_p6), %s4279_s13, 16, %s662_s10, [#allocation30]  }
  0xd4   : > { %s4280_s15 = sld [smem:[#allocation72_spill]] }
  0xda   : > { %s2783_s18 = scalar_lea.hbm %s4280_s15, 256 }
  0xdb   : > { %p2784_p7 = scmp.ne.s32.totalorder %s4280_s15, %s2783_s18  ;;  %p2790_p1 = scmp.lt.u32.totalorder %s2783_s18, %s4280_s15 }
  0xdd   : > { %p2786_p9 = pnand %p2784_p7, %p3512_p8 }
  0xdf   : > { %p2787_p4 = pneg %p2786_p9 }
  0xe1   : > { %p2792_p3 = pnand %p2790_p1, %p2787_p4 }
  0xe3   : > { %2795 = shalt.err (!%p2792_p3)
}
  0xe4   : > { %s2796_s0 = scalar_lea.vmem %s683_s26, 256  ;;  %p2804_p13 = scmp.lt.s32.totalorder %s683_s26, %s683_s26 }
  0xe5   : > { %p2797_p10 = scmp.ne.s32.totalorder %s683_s26, %s2796_s0  ;;  %p2805_p0 = scmp.lt.s32.totalorder %s2796_s0, %s2796_s0 }
  0xe7   : > { %p2799_p11 = pnand %p2797_p10, %p3512_p8  ;;  %p2806_p2 = por %p2805_p0, %p2804_p13 }
  0xe9   : > { %p2800_p12 = pneg %p2799_p11 }
  0xeb   : > { %p2807_p5 = pnand %p2806_p2, %p2800_p12 }
  0xed   : > { %2810 = shalt.err (!%p2807_p5)
}
  0xee   : > { %2431 = dma.hbm_to_vmem [thread:$0]  (!%p3496_p6), %s4280_s15, 256, %s683_s26, [#allocation33], %s4226_s12, %s4226_s12, %s4228_s14  }
  0xef   : > { %s3322_s5 = smov [#allocation35]   ;;  %s4281_s17 = sld [smem:[#allocation74_spill]] }
  0xf0   : > { %s709_s27 = sshll.u32 %s3322_s5, 4  ;;  %s710_s27 = int_to_ptr.vmem [resolvable:$true] %s709_s27 }
  0xf5   : > { %s2811_s18 = scalar_lea.hbm %s4281_s17, 16 }
  0xf6   : > { %p2812_p7 = scmp.ne.s32.totalorder %s4281_s17, %s2811_s18  ;;  %p2818_p1 = scmp.lt.u32.totalorder %s2811_s18, %s4281_s17 }
  0xf8   : > { %p2814_p9 = pnand %p2812_p7, %p3512_p8 }
  0xfa   : > { %p2815_p4 = pneg %p2814_p9 }
  0xfc   : > { %p2820_p3 = pnand %p2818_p1, %p2815_p4 }
  0xfe   : > { %2823 = shalt.err (!%p2820_p3)
}
  0xff   : > { %s2824_s26 = scalar_lea.vmem %s710_s27, 16  ;;  %s2831_s0 = scalar_lea.vmem %s710_s27, 32 }
 0x100   : > { %p2825_p10 = scmp.ne.s32.totalorder %s710_s27, %s2824_s26  ;;  %p2832_p13 = scmp.lt.s32.totalorder %s710_s27, %s710_s27 }
 0x101   : > { %p2833_p0 = scmp.lt.s32.totalorder %s2831_s0, %s2824_s26 }
 0x102   : > { %p2827_p11 = pnand %p2825_p10, %p3512_p8 }
 0x103   : > { %p2834_p2 = por %p2833_p0, %p2832_p13 }
 0x104   : > { %p2828_p12 = pneg %p2827_p11 }
 0x106   : > { %p2835_p5 = pnand %p2834_p2, %p2828_p12 }
 0x108   : > { %2838 = shalt.err (!%p2835_p5)
}
 0x109   : > { %2437 = dma.hbm_to_vmem [thread:$0]  (!%p3496_p6), %s4281_s17, 16, %s710_s27, [#allocation36]  }
 0x10a   : > { %s2120_s5 = sadd.s32 4294967294, %s3307_s25   ;;  %s60_s19 = sadd.s32 1, %s3303_s2 }
 0x10b   : > { %p62_p7 = scmp.ge.s32.totalorder %s60_s19, 2  ;;  %s69_s20 = sadd.s32 1, %s3295_s23 }
 0x10c   : > { %p76_p9 = scmp.ne.s32.totalorder %s3295_s23, %s3291_s22  ;;  %p77_p4 = scmp.eq.s32.totalorder %s3307_s25, 0 }
 0x10d   : > { %s4344_s19 = smov (%p62_p7, %s60_s19), 0  ;;  %p82_p3 = scmp.ne.s32.totalorder %s3291_s22, %s3287_s1 }
 0x10e   : > { %4282 = sst [smem:[#allocation55_spill]] %s4344_s19  ;;  %p3683_p1 = por %p77_p4, %p76_p9 }
 0x10f   : > { %s64_s27 = ssub.s32 %s3303_s2, %s4344_s19  ;;  %p517_p10 = scmp.eq.s32.totalorder %s3482_s3, 1 }
 0x110   : > { %p67_p11 = scmp.eq.s32.totalorder %s64_s27, 0  ;;  %p4284_p12 = scmp.eq.s32.totalorder %s3482_s3, 0 }
 0x111   : > { %p3698_p0 = por %p517_p10, %p76_p9  ;;  %p523_p2 = scmp.eq.s32.totalorder %s2120_s5, 1 }
 0x112   : > { %p3694_p13 = por %p4284_p12, %p82_p3  ;;  %p2475_p7 = scmp.lt.s32.totalorder %s3307_s25, 2 }
 0x113   : > { %s4286_s24 = scalar_select %p3698_p0, 1, 0 }
 0x114   : > { %s4285_s28 = scalar_select %p3694_p13, 1, 0 }
 0x115   : > { %s3703_s29 = scalar_select %p67_p11, %s3295_s23, %s69_s20  }
 0x116   : > { %p3705_p5 = por %p523_p2, %p82_p3  ;;  %s3711_s26 = sand.u32 1, %s3295_s23  }
 0x117   : > { %4287 = sst [smem:[#allocation56_spill]] %s3703_s29  ;;  %s763_s0 = sand.u32 1, %s3307_s25  }
 0x118   : > { %s4288_s16 = scalar_select %p3705_p5, 1, 0 }
 0x119   : > { %p3716_p4 = pnand %p2475_p7, %p3683_p1  ;;  %s2142_s21 = sshll.u32 %s3711_s26, 2 }
 0x11a   : > { %s2143_s27 = sshll.u32 %s3303_s2, 6  ;;  %s4290_s12 = sld [smem:[#allocation58_spill]] }
 0x11b   : > { %s4289_s10 = scalar_select %p3716_p4, 1, 0 }
 0x11c   : > { %s767_s7 = scalar_lea.vmem [#allocation11], %s2142_s21  ;;  %s3729_s18 = scalar_lea.sflag [#allocation12], %s763_s0 }
 0x11d   : > { %s774_s9 = sshll.u32 %s767_s7, 4  ;;  %p3735_p1 = pneg %p3716_p4  ;;  %s3727_s9 = int_to_ptr.vmem [resolvable:$true] %s774_s9 }
 0x11f   : > { %s4291_s13 = scalar_select %p3735_p1, 1, 0 }
 0x120   : > { %s3725_s14 = scalar_lea.hbm %s4290_s12, %s2143_s27  ;;  %s2844_s21 = scalar_lea.hbm %s4290_s12, 128 }
 0x121   : > { %s2839_s11 = scalar_lea.hbm %s3725_s14, 64  ;;  %p2845_p11 = scmp.lt.u32.totalorder %s3725_s14, %s4290_s12 }
 0x122   : > { %p2840_p9 = scmp.ne.s32.totalorder %s3725_s14, %s2839_s11  ;;  %p2846_p12 = scmp.lt.u32.totalorder %s2844_s21, %s2839_s11 }
 0x123   : > { %p2848_p7 = scmp.lt.u32.totalorder %s2839_s11, %s3725_s14 }
 0x124   : > { %p2842_p3 = pnand %p3735_p1, %p2840_p9  ;;  %p2847_p2 = por %p2846_p12, %p2845_p11 }
 0x126   : > { %p2843_p10 = pneg %p2842_p3  ;;  %p2849_p5 = por %p2848_p7, %p2847_p2 }
 0x128   : > { %p2850_p0 = pnand %p2849_p5, %p2843_p10 }
 0x12a   : > { %2853 = shalt.err (!%p2850_p0)
}
 0x12b   : > { %s2854_s0 = scalar_lea.vmem %s3727_s9, 64  ;;  %s3323_s27 = smov [#allocation11]  }
 0x12c   : > { %p2855_p9 = scmp.ne.s32.totalorder %s3727_s9, %s2854_s0  ;;  %s2859_s5 = sshll.u32 %s3323_s27, 4  ;;  %s2860_s5 = int_to_ptr.vmem [resolvable:$false] %s2859_s5 }
 0x12d   : > { %s2861_s7 = scalar_lea.vmem %s2860_s5, 128  ;;  %p2862_p6 = scmp.lt.s32.totalorder %s3727_s9, %s2860_s5 }
 0x12e   : > { %p2857_p3 = pnand %p2855_p9, %p3735_p1  ;;  %p2863_p8 = scmp.lt.s32.totalorder %s2861_s7, %s2854_s0 }
 0x130   : > { %p2858_p13 = pneg %p2857_p3  ;;  %p2864_p11 = por %p2863_p8, %p2862_p6 }
 0x132   : > { %p2865_p12 = pnand %p2864_p11, %p2858_p13 }
 0x134   : > { %2868 = shalt.err (!%p2865_p12)
}
 0x135   : > { %2450 = dma.hbm_to_vmem [thread:$0]  (!%p3716_p4), %s3725_s14, 64, %s3727_s9, %s3729_s18  }
 0x136   : > { %s3324_s11 = smov [#allocation16]   ;;  %s3325_s20 = smov [#allocation19]  }
 0x137   : > { %s554_s21 = sshll.u32 %s3324_s11, 4  ;;  %s578_s12 = sshll.u32 %s3325_s20, 4  ;;  %s555_s21 = int_to_ptr.vmem [resolvable:$true] %s554_s21  ;;  %s579_s12 = int_to_ptr.vmem [resolvable:$true] %s578_s12 }
 0x138   : > { %s4292_s17 = sld [smem:[#allocation61_spill]]  ;;  %p4293_p8 = scmp.ne.s32.totalorder %s4274_s4, 0 }
 0x13e   : > { %s2869_s5 = scalar_lea.hbm %s4292_s17, 16 }
 0x13f   : > { %p2870_p6 = scmp.ne.s32.totalorder %s4292_s17, %s2869_s5  ;;  %p2876_p5 = scmp.lt.u32.totalorder %s2869_s5, %s4292_s17 }
 0x141   : > { %p2872_p13 = pnand %p2870_p6, %p4293_p8 }
 0x143   : > { %p2873_p0 = pneg %p2872_p13 }
 0x145   : > { %p2878_p10 = pnand %p2876_p5, %p2873_p0 }
 0x147   : > { %2881 = shalt.err (!%p2878_p10)
}
 0x148   : > { %s2882_s9 = scalar_lea.vmem %s555_s21, 16  ;;  %s2889_s15 = scalar_lea.vmem %s555_s21, 32 }
 0x149   : > { %p2883_p2 = scmp.ne.s32.totalorder %s555_s21, %s2882_s9  ;;  %p2890_p3 = scmp.lt.s32.totalorder %s555_s21, %s555_s21 }
 0x14a   : > { %p2891_p11 = scmp.lt.s32.totalorder %s2889_s15, %s2882_s9 }
 0x14b   : > { %p2885_p7 = pnand %p2883_p2, %p4293_p8 }
 0x14c   : > { %p2892_p12 = por %p2891_p11, %p2890_p3 }
 0x14d   : > { %p2886_p9 = pneg %p2885_p7 }
 0x14f   : > { %p2893_p4 = pnand %p2892_p12, %p2886_p9 }
 0x151   : > { %2896 = shalt.err (!%p2893_p4)
}
 0x152   : > { %p4294_p6 = scmp.ne.s32.totalorder %s4272_s30, 0  ;;  %s4295_s6 = sld [smem:[#allocation63_spill]] }
 0x154   : > { %2398 = dma.hbm_to_vmem [thread:$0]  (!%p4294_p6), %s4292_s17, 16, %s555_s21, [#allocation15]  }
 0x158   : > { %s2897_s20 = scalar_lea.hbm %s4295_s6, 16 }
 0x159   : > { %p2898_p13 = scmp.ne.s32.totalorder %s4295_s6, %s2897_s20  ;;  %p2904_p4 = scmp.lt.u32.totalorder %s2897_s20, %s4295_s6 }
 0x15b   : > { %p2900_p0 = pnand %p2898_p13, %p4293_p8 }
 0x15d   : > { %p2901_p5 = pneg %p2900_p0 }
 0x15f   : > { %p2906_p10 = pnand %p2904_p4, %p2901_p5 }
 0x161   : > { %2909 = shalt.err (!%p2906_p10)
}
 0x162   : > { %s2910_s9 = scalar_lea.vmem %s579_s12, 16  ;;  %s2917_s21 = scalar_lea.vmem %s579_s12, 32 }
 0x163   : > { %p2911_p2 = scmp.ne.s32.totalorder %s579_s12, %s2910_s9  ;;  %p2918_p3 = scmp.lt.s32.totalorder %s579_s12, %s579_s12 }
 0x164   : > { %p2919_p11 = scmp.lt.s32.totalorder %s2917_s21, %s2910_s9 }
 0x165   : > { %p2913_p7 = pnand %p2911_p2, %p4293_p8 }
 0x166   : > { %p2920_p12 = por %p2919_p11, %p2918_p3 }
 0x167   : > { %p2914_p9 = pneg %p2913_p7 }
 0x169   : > { %p2921_p1 = pnand %p2920_p12, %p2914_p9 }
 0x16b   : > { %2924 = shalt.err (!%p2921_p1)
}
 0x16c   : > { %2404 = dma.hbm_to_vmem [thread:$0]  (!%p4294_p6), %s4295_s6, 16, %s579_s12, [#allocation18]  }
 0x16d   : > { %s3326_s11 = smov [#allocation22]   ;;  %s3327_s29 = smov [#allocation25]  }
 0x16e   : > { %s602_s19 = sshll.u32 %s3326_s11, 4  ;;  %s626_s20 = sshll.u32 %s3327_s29, 4  ;;  %s603_s19 = int_to_ptr.vmem [resolvable:$true] %s602_s19  ;;  %s627_s20 = int_to_ptr.vmem [resolvable:$true] %s626_s20 }
 0x16f   : > { %s4296_s8 = sld [smem:[#allocation65_spill]] }
 0x175   : > { %s2925_s0 = scalar_lea.hbm %s4296_s8, 16 }
 0x176   : > { %p2926_p1 = scmp.ne.s32.totalorder %s4296_s8, %s2925_s0  ;;  %p2932_p5 = scmp.lt.u32.totalorder %s2925_s0, %s4296_s8 }
 0x178   : > { %p2928_p13 = pnand %p2926_p1, %p4293_p8 }
 0x17a   : > { %p2929_p0 = pneg %p2928_p13 }
 0x17c   : > { %p2934_p4 = pnand %p2932_p5, %p2929_p0 }
 0x17e   : > { %2937 = shalt.err (!%p2934_p4)
}
 0x17f   : > { %s2938_s12 = scalar_lea.vmem %s603_s19, 16  ;;  %s2945_s14 = scalar_lea.vmem %s603_s19, 32 }
 0x180   : > { %p2939_p10 = scmp.ne.s32.totalorder %s603_s19, %s2938_s12  ;;  %p2946_p9 = scmp.lt.s32.totalorder %s603_s19, %s603_s19 }
 0x181   : > { %p2947_p3 = scmp.lt.s32.totalorder %s2945_s14, %s2938_s12 }
 0x182   : > { %p2941_p2 = pnand %p2939_p10, %p4293_p8 }
 0x183   : > { %p2948_p11 = por %p2947_p3, %p2946_p9 }
 0x184   : > { %p2942_p7 = pneg %p2941_p2 }
 0x186   : > { %p2949_p12 = pnand %p2948_p11, %p2942_p7 }
 0x188   : > { %2952 = shalt.err (!%p2949_p12)
}
 0x189   : > { %2410 = dma.hbm_to_vmem [thread:$0]  (!%p4294_p6), %s4296_s8, 16, %s603_s19, [#allocation21]  }
 0x18a   : > { %s4297_s0 = sld [smem:[#allocation67_spill]] }
 0x190   : > { %s2953_s7 = scalar_lea.hbm %s4297_s0, 16 }
 0x191   : > { %p2954_p1 = scmp.ne.s32.totalorder %s4297_s0, %s2953_s7  ;;  %p2960_p5 = scmp.lt.u32.totalorder %s2953_s7, %s4297_s0 }
 0x193   : > { %p2956_p13 = pnand %p2954_p1, %p4293_p8 }
 0x195   : > { %p2957_p0 = pneg %p2956_p13 }
 0x197   : > { %p2962_p4 = pnand %p2960_p5, %p2957_p0 }
 0x199   : > { %2965 = shalt.err (!%p2962_p4)
}
 0x19a   : > { %s2966_s14 = scalar_lea.vmem %s627_s20, 16  ;;  %s2973_s19 = scalar_lea.vmem %s627_s20, 32 }
 0x19b   : > { %p2967_p10 = scmp.ne.s32.totalorder %s627_s20, %s2966_s14  ;;  %p2974_p9 = scmp.lt.s32.totalorder %s627_s20, %s627_s20 }
 0x19c   : > { %p2975_p3 = scmp.lt.s32.totalorder %s2973_s19, %s2966_s14 }
 0x19d   : > { %p2969_p2 = pnand %p2967_p10, %p4293_p8 }
 0x19e   : > { %p2976_p11 = por %p2975_p3, %p2974_p9 }
 0x19f   : > { %p2970_p7 = pneg %p2969_p2 }
 0x1a1   : > { %p2977_p12 = pnand %p2976_p11, %p2970_p7 }
 0x1a3   : > { %2980 = shalt.err (!%p2977_p12)
}
 0x1a4   : > { %2416 = dma.hbm_to_vmem [thread:$0]  (!%p4294_p6), %s4297_s0, 16, %s627_s20, [#allocation24]  }
 0x1a5   : > { %s3328_s27 = smov [#allocation28]   ;;  %s3329_s7 = smov [#allocation31]  }
 0x1a6   : > { %s650_s5 = sshll.u32 %s3328_s27, 4  ;;  %s672_s9 = sshll.u32 %s3329_s7, 4  ;;  %s651_s5 = int_to_ptr.vmem [resolvable:$true] %s650_s5  ;;  %s673_s9 = int_to_ptr.vmem [resolvable:$true] %s672_s9 }
 0x1a7   : > { %s4298_s12 = sld [smem:[#allocation69_spill]] }
 0x1ad   : > { %s2981_s6 = scalar_lea.hbm %s4298_s12, 16 }
 0x1ae   : > { %p2982_p1 = scmp.ne.s32.totalorder %s4298_s12, %s2981_s6  ;;  %p2988_p5 = scmp.lt.u32.totalorder %s2981_s6, %s4298_s12 }
 0x1b0   : > { %p2984_p13 = pnand %p2982_p1, %p4293_p8 }
 0x1b2   : > { %p2985_p0 = pneg %p2984_p13 }
 0x1b4   : > { %p2990_p4 = pnand %p2988_p5, %p2985_p0 }
 0x1b6   : > { %2993 = shalt.err (!%p2990_p4)
}
 0x1b7   : > { %s2994_s20 = scalar_lea.vmem %s651_s5, 16  ;;  %s3001_s29 = scalar_lea.vmem %s651_s5, 32 }
 0x1b8   : > { %p2995_p10 = scmp.ne.s32.totalorder %s651_s5, %s2994_s20  ;;  %p3002_p9 = scmp.lt.s32.totalorder %s651_s5, %s651_s5 }
 0x1b9   : > { %p3003_p3 = scmp.lt.s32.totalorder %s3001_s29, %s2994_s20 }
 0x1ba   : > { %p2997_p2 = pnand %p2995_p10, %p4293_p8 }
 0x1bb   : > { %p3004_p11 = por %p3003_p3, %p3002_p9 }
 0x1bc   : > { %p2998_p7 = pneg %p2997_p2 }
 0x1be   : > { %p3005_p12 = pnand %p3004_p11, %p2998_p7 }
 0x1c0   : > { %3008 = shalt.err (!%p3005_p12)
}
 0x1c1   : > { %2422 = dma.hbm_to_vmem [thread:$0]  (!%p4294_p6), %s4298_s12, 16, %s651_s5, [#allocation27]  }
 0x1c2   : > { %s4299_s21 = sld [smem:[#allocation71_spill]] }
 0x1c8   : > { %s3009_s15 = scalar_lea.hbm %s4299_s21, 16 }
 0x1c9   : > { %p3010_p1 = scmp.ne.s32.totalorder %s4299_s21, %s3009_s15  ;;  %p3016_p5 = scmp.lt.u32.totalorder %s3009_s15, %s4299_s21 }
 0x1cb   : > { %p3012_p13 = pnand %p3010_p1, %p4293_p8 }
 0x1cd   : > { %p3013_p0 = pneg %p3012_p13 }
 0x1cf   : > { %p3018_p4 = pnand %p3016_p5, %p3013_p0 }
 0x1d1   : > { %3021 = shalt.err (!%p3018_p4)
}
 0x1d2   : > { %s3022_s29 = scalar_lea.vmem %s673_s9, 16  ;;  %s3029_s5 = scalar_lea.vmem %s673_s9, 32 }
 0x1d3   : > { %p3023_p10 = scmp.ne.s32.totalorder %s673_s9, %s3022_s29  ;;  %p3030_p9 = scmp.lt.s32.totalorder %s673_s9, %s673_s9 }
 0x1d4   : > { %p3031_p3 = scmp.lt.s32.totalorder %s3029_s5, %s3022_s29 }
 0x1d5   : > { %p3025_p2 = pnand %p3023_p10, %p4293_p8 }
 0x1d6   : > { %p3032_p11 = por %p3031_p3, %p3030_p9 }
 0x1d7   : > { %p3026_p7 = pneg %p3025_p2 }
 0x1d9   : > { %p3033_p12 = pnand %p3032_p11, %p3026_p7 }
 0x1db   : > { %3036 = shalt.err (!%p3033_p12)
}
 0x1dc   : > { %2428 = dma.hbm_to_vmem [thread:$0]  (!%p4294_p6), %s4299_s21, 16, %s673_s9, [#allocation30]  }
 0x1dd   : > { %s3330_s6 = smov [#allocation34]   ;;  %s3331_s15 = smov [#allocation37]  }
 0x1de   : > { %s695_s8 = sshll.u32 %s3330_s6, 4  ;;  %s719_s14 = sshll.u32 %s3331_s15, 4  ;;  %s696_s8 = int_to_ptr.vmem [resolvable:$true] %s695_s8  ;;  %s720_s14 = int_to_ptr.vmem [resolvable:$true] %s719_s14 }
 0x1df   : > { %s4300_s20 = sld [smem:[#allocation73_spill]] }
 0x1e5   : > { %s3037_s0 = scalar_lea.hbm %s4300_s20, 256 }
 0x1e6   : > { %p3038_p1 = scmp.ne.s32.totalorder %s4300_s20, %s3037_s0  ;;  %p3044_p5 = scmp.lt.u32.totalorder %s3037_s0, %s4300_s20 }
 0x1e8   : > { %p3040_p13 = pnand %p3038_p1, %p4293_p8 }
 0x1ea   : > { %p3041_p0 = pneg %p3040_p13 }
 0x1ec   : > { %p3046_p4 = pnand %p3044_p5, %p3041_p0 }
 0x1ee   : > { %3049 = shalt.err (!%p3046_p4)
}
 0x1ef   : > { %s3050_s9 = scalar_lea.vmem %s696_s8, 256  ;;  %p3058_p9 = scmp.lt.s32.totalorder %s696_s8, %s696_s8 }
 0x1f0   : > { %p3051_p10 = scmp.ne.s32.totalorder %s696_s8, %s3050_s9  ;;  %p3059_p3 = scmp.lt.s32.totalorder %s3050_s9, %s3050_s9 }
 0x1f2   : > { %p3053_p2 = pnand %p3051_p10, %p4293_p8  ;;  %p3060_p11 = por %p3059_p3, %p3058_p9 }
 0x1f4   : > { %p3054_p7 = pneg %p3053_p2 }
 0x1f6   : > { %p3061_p12 = pnand %p3060_p11, %p3054_p7 }
 0x1f8   : > { %3064 = shalt.err (!%p3061_p12)
}
 0x1f9   : > { %s4301_s7 = smov 4   ;;  %s4302_s6 = smov 64  }
 0x1fa   : > { %2434 = dma.hbm_to_vmem [thread:$0]  (!%p4294_p6), %s4300_s20, 256, %s696_s8, [#allocation33], %s4302_s6, %s4302_s6, %s4301_s7  }
 0x1fb   : > { %s4303_s11 = sld [smem:[#allocation75_spill]] }
 0x201   : > { %s3065_s29 = scalar_lea.hbm %s4303_s11, 512 }
 0x202   : > { %p3066_p1 = scmp.ne.s32.totalorder %s4303_s11, %s3065_s29  ;;  %p3072_p5 = scmp.lt.u32.totalorder %s3065_s29, %s4303_s11 }
 0x204   : > { %p3068_p13 = pnand %p3066_p1, %p4293_p8 }
 0x206   : > { %p3069_p0 = pneg %p3068_p13 }
 0x208   : > { %p3074_p4 = pnand %p3072_p5, %p3069_p0 }
 0x20a   : > { %3077 = shalt.err (!%p3074_p4)
}
 0x20b   : > { %s3078_s12 = scalar_lea.vmem %s720_s14, 512  ;;  %p3086_p9 = scmp.lt.s32.totalorder %s720_s14, %s720_s14 }
 0x20c   : > { %p3079_p10 = scmp.ne.s32.totalorder %s720_s14, %s3078_s12  ;;  %p3087_p3 = scmp.lt.s32.totalorder %s3078_s12, %s3078_s12 }
 0x20e   : > { %p3081_p2 = pnand %p3079_p10, %p4293_p8  ;;  %p3088_p11 = por %p3087_p3, %p3086_p9 }
 0x210   : > { %p3082_p7 = pneg %p3081_p2 }
 0x212   : > { %p3089_p12 = pnand %p3088_p11, %p3082_p7 }
 0x214   : > { %3092 = shalt.err (!%p3089_p12)
}
 0x215   : > { %2440 = dma.hbm_to_vmem [thread:$0]  (!%p4294_p6), %s4303_s11, 512, %s720_s14, [#allocation36], %s4302_s6, %s4302_s6, %s4301_s7  }
 0x216   : > { %s3332_s0 = smov [#allocation38]   ;;  %s2140_s19 = sshll.u32 %s3711_s26, 3 }
 0x217   : > { %s733_s15 = sshll.u32 %s3332_s0, 4  ;;  %s4304_s27 = sld [smem:[#allocation76_spill]]  ;;  %s734_s15 = int_to_ptr.vmem [resolvable:$true] %s733_s15 }
 0x21d   : > { %s3093_s9 = scalar_lea.hbm %s4304_s27, 16 }
 0x21e   : > { %p3094_p1 = scmp.ne.s32.totalorder %s4304_s27, %s3093_s9  ;;  %p3100_p5 = scmp.lt.u32.totalorder %s3093_s9, %s4304_s27 }
 0x220   : > { %p3096_p13 = pnand %p3094_p1, %p4293_p8 }
 0x222   : > { %p3097_p0 = pneg %p3096_p13 }
 0x224   : > { %p3102_p4 = pnand %p3100_p5, %p3097_p0 }
 0x226   : > { %3105 = shalt.err (!%p3102_p4)
}
 0x227   : > { %s3106_s14 = scalar_lea.vmem %s734_s15, 16  ;;  %s3113_s7 = scalar_lea.vmem %s734_s15, 32 }
 0x228   : > { %p3107_p10 = scmp.ne.s32.totalorder %s734_s15, %s3106_s14  ;;  %p3114_p9 = scmp.lt.s32.totalorder %s734_s15, %s734_s15 }
 0x229   : > { %p3115_p3 = scmp.lt.s32.totalorder %s3113_s7, %s3106_s14 }
 0x22a   : > { %p3109_p2 = pnand %p3107_p10, %p4293_p8 }
 0x22b   : > { %p3116_p11 = por %p3115_p3, %p3114_p9 }
 0x22c   : > { %p3110_p7 = pneg %p3109_p2 }
 0x22e   : > { %p3117_p12 = pnand %p3116_p11, %p3110_p7 }
 0x230   : > { %3120 = shalt.err (!%p3117_p12)
}
 0x231   : > { %2443 = dma.hbm_to_vmem [thread:$0]  (!%p4294_p6), %s4304_s27, 16, %s734_s15, [#allocation39]  }
 0x232   : > { %s2141_s21 = sshll.u32 %s3303_s2, 7  ;;  %s4305_s0 = sld [smem:[#allocation57_spill]] }
 0x233   : > { %s748_s5 = scalar_lea.vmem [#allocation8], %s2140_s19  ;;  %s745_s30 = scalar_lea.sflag [#allocation9], %s3711_s26 }
 0x234   : > { %s756_s9 = sshll.u32 %s748_s5, 4  ;;  %p4306_p1 = scmp.ne.s32.totalorder %s4291_s13, 0  ;;  %s757_s9 = int_to_ptr.vmem [resolvable:$true] %s756_s9 }
 0x238   : > { %s3932_s29 = scalar_lea.hbm %s4305_s0, %s2141_s21  ;;  %s3126_s14 = scalar_lea.hbm %s4305_s0, 256 }
 0x239   : > { %s3121_s12 = scalar_lea.hbm %s3932_s29, 128  ;;  %p3127_p6 = scmp.lt.u32.totalorder %s3932_s29, %s4305_s0 }
 0x23a   : > { %p3122_p8 = scmp.ne.s32.totalorder %s3932_s29, %s3121_s12  ;;  %p3128_p5 = scmp.lt.u32.totalorder %s3126_s14, %s3121_s12 }
 0x23b   : > { %p3130_p10 = scmp.lt.u32.totalorder %s3121_s12, %s3932_s29 }
 0x23c   : > { %p3124_p13 = pnand %p3122_p8, %p4306_p1  ;;  %p3129_p4 = por %p3128_p5, %p3127_p6 }
 0x23e   : > { %p3125_p0 = pneg %p3124_p13  ;;  %p3131_p2 = por %p3130_p10, %p3129_p4 }
 0x240   : > { %p3132_p7 = pnand %p3131_p2, %p3125_p0 }
 0x242   : > { %3135 = shalt.err (!%p3132_p7)
}
 0x243   : > { %s3136_s19 = scalar_lea.vmem %s757_s9, 128  ;;  %s3333_s6 = smov [#allocation8]  }
 0x244   : > { %p3137_p9 = scmp.ne.s32.totalorder %s757_s9, %s3136_s19  ;;  %s3141_s21 = sshll.u32 %s3333_s6, 4  ;;  %s3142_s21 = int_to_ptr.vmem [resolvable:$false] %s3141_s21 }
 0x245   : > { %s3143_s8 = scalar_lea.vmem %s3142_s21, 256  ;;  %p3144_p12 = scmp.lt.s32.totalorder %s757_s9, %s3142_s21 }
 0x246   : > { %p3139_p3 = pnand %p3137_p9, %p4306_p1  ;;  %p3145_p8 = scmp.lt.s32.totalorder %s3143_s8, %s3136_s19 }
 0x248   : > { %p3140_p11 = pneg %p3139_p3  ;;  %p3146_p13 = por %p3145_p8, %p3144_p12 }
 0x24a   : > { %p3147_p5 = pnand %p3146_p13, %p3140_p11 }
 0x24c   : > { %3150 = shalt.err (!%p3147_p5)
}
 0x24d   : > { %p4307_p6 = scmp.ne.s32.totalorder %s4289_s10, 0  ;;  %s2144_s4 = sshll.u32 %s3303_s2, 4 }
 0x24e   : > { %s784_s5 = scalar_lea.vmem [#allocation13], %s3711_s26  ;;  %s4308_s14 = sld [smem:[#allocation59_spill]] }
 0x24f   : > { %2447 = dma.hbm_to_vmem [thread:$0]  (!%p4307_p6), %s3932_s29, 128, %s757_s9, %s745_s30  }
 0x250   : > { %s791_s12 = sshll.u32 %s784_s5, 4  ;;  %s792_s12 = int_to_ptr.vmem [resolvable:$true] %s791_s12 }
 0x254   : > { %s789_s7 = scalar_lea.hbm %s4308_s14, %s2144_s4  ;;  %s3156_s21 = scalar_lea.hbm %s4308_s14, 32 }
 0x255   : > { %s3151_s20 = scalar_lea.hbm %s789_s7, 16  ;;  %p3157_p2 = scmp.lt.u32.totalorder %s789_s7, %s4308_s14 }
 0x256   : > { %p3152_p0 = scmp.ne.s32.totalorder %s789_s7, %s3151_s20  ;;  %p3158_p7 = scmp.lt.u32.totalorder %s3156_s21, %s3151_s20 }
 0x257   : > { %p3160_p3 = scmp.lt.u32.totalorder %s3151_s20, %s789_s7 }
 0x258   : > { %p3154_p4 = pnand %p3152_p0, %p4306_p1  ;;  %p3159_p9 = por %p3158_p7, %p3157_p2 }
 0x25a   : > { %p3155_p10 = pneg %p3154_p4  ;;  %p3161_p11 = por %p3160_p3, %p3159_p9 }
 0x25c   : > { %p3162_p12 = pnand %p3161_p11, %p3155_p10 }
 0x25e   : > { %3165 = shalt.err (!%p3162_p12)
}
 0x25f   : > { %s3166_s26 = scalar_lea.vmem %s792_s12, 16  ;;  %s3334_s29 = smov [#allocation13]  }
 0x260   : > { %p3167_p8 = scmp.ne.s32.totalorder %s792_s12, %s3166_s26  ;;  %s3171_s9 = sshll.u32 %s3334_s29, 4  ;;  %s3172_s9 = int_to_ptr.vmem [resolvable:$false] %s3171_s9 }
 0x261   : > { %s3173_s30 = scalar_lea.vmem %s3172_s9, 32  ;;  %p3174_p0 = scmp.lt.s32.totalorder %s792_s12, %s3172_s9 }
 0x262   : > { %p3169_p13 = pnand %p3167_p8, %p4306_p1  ;;  %p3175_p4 = scmp.lt.s32.totalorder %s3173_s30, %s3166_s26 }
 0x264   : > { %p3170_p5 = pneg %p3169_p13  ;;  %p3176_p6 = por %p3175_p4, %p3174_p0 }
 0x266   : > { %p3177_p2 = pnand %p3176_p6, %p3170_p5 }
 0x268   : > { %3180 = shalt.err (!%p3177_p2)
}
 0x269   : > { %p4309_p7 = scmp.ne.s32.totalorder %s4289_s10, 0  ;;  %s4310_s0 = sld [smem:[#allocation54_spill]] }
 0x26b   : > { %2453 = dma.hbm_to_vmem [thread:$0]  (!%p4309_p7), %s789_s7, 16, %s792_s12, %s3729_s18  }
 0x26f   : > { %p4311_p10 = scmp.ne.s32.totalorder %s4310_s0, 0 }
 0x270   : > { %s3973_s13 = sand.u32 (!%p4311_p10), 1, %s3291_s22   ;;  %p4312_p1 = scmp.ne.s32.totalorder (!%p4311_p10), %s4285_s28, 0 }
 0x271   : > { %800 = sbr.rel (%p4311_p10) target bundleno = 3086 (0xc0e), region = 100  ;;  %s2146_s4 = sshll.u32 (!%p4311_p10), %s3973_s13, 3 }
 0x272   : > { %s803_s5 = scalar_lea.sflag (!%p4311_p10), [#allocation9], %s3973_s13  ;;  %s3977_s15 = scalar_lea.vmem (!%p4311_p10), [#allocation8], %s2146_s4 }
 0x278   : > { %3238 = dma.done.wait (%p4312_p1), %s803_s5, 128  }
 0x279   : > { %3240 = vsyncadd (%p4312_p1), %s803_s5, 4294967168  ;;  %s811_s10 = sand.u32 1, %s3482_s3   ;;  %s2147_s18 = sshll.u32 %s3973_s13, 2 }
 0x27a   : > { %s812_s12 = scalar_lea.sflag [#allocation12], %s811_s10  ;;  %s815_s17 = scalar_lea.vmem [#allocation11], %s2147_s18 }
 0x27b   : > { %3242 = dma.done.wait (%p4312_p1), %s812_s12, 80  }
 0x27c   : > { %3244 = vsyncadd (%p4312_p1), %s812_s12, 4294967216  ;;  %s823_s7 = scalar_lea.vmem [#allocation13], %s3973_s13  ;;  %p4313_p6 = scmp.eq.s32.totalorder %s3482_s3, 0 }
 0x27e   : > { %3246 = dma.done.wait (%p4313_p6), [#allocation15], 32   ;;  %p4314_p9 = pmov %p4313_p6 }
 0x27f   : > { %p4315_p3 = pmov %p4313_p6 }
 0x280   : > { %3248 = vsyncadd (%p4314_p9), [#allocation15], 4294967264 }
 0x281   : > { %3250 = dma.done.wait (%p4315_p3), [#allocation18], 272   ;;  %p4316_p11 = pmov %p4315_p3 }
 0x282   : > { %p4317_p12 = pmov %p4315_p3 }
 0x283   : > { %3252 = vsyncadd (%p4316_p11), [#allocation18], 4294967024 }
 0x284   : > { %3254 = dma.done.wait (%p4317_p12), [#allocation21], 272   ;;  %p4318_p8 = pmov %p4315_p3 }
 0x285   : > { %p4319_p13 = pmov %p4315_p3 }
 0x286   : > { %3256 = vsyncadd (%p4318_p8), [#allocation21], 4294967024 }
 0x287   : > { %3258 = dma.done.wait (%p4319_p13), [#allocation24], 272   ;;  %p4320_p5 = pmov %p4315_p3 }
 0x288   : > { %p4321_p0 = pmov %p4315_p3 }
 0x289   : > { %3260 = vsyncadd (%p4320_p5), [#allocation24], 4294967024 }
 0x28a   : > { %3262 = dma.done.wait (%p4321_p0), [#allocation27], 272   ;;  %p4322_p4 = pmov %p4321_p0 }
 0x28b   : > { %p4323_p2 = pmov %p4321_p0 }
 0x28c   : > { %3264 = vsyncadd (%p4322_p4), [#allocation27], 4294967024 }
 0x28d   : > { %3266 = dma.done.wait (%p4323_p2), [#allocation30], 32   ;;  %p4324_p7 = pmov %p4321_p0 }
 0x28e   : > { %p4325_p10 = pmov %p4321_p0 }
 0x28f   : > { %3268 = vsyncadd (%p4324_p7), [#allocation30], 4294967264 }
 0x290   : > { %3270 = dma.done.wait (%p4325_p10), [#allocation33], 512   ;;  %p4326_p1 = pmov %p4321_p0 }
 0x291   : > { %p4327_p6 = pmov %p4321_p0 }
 0x292   : > { %3272 = vsyncadd (%p4326_p1), [#allocation33], 4294966784 }
 0x293   : > { %3274 = dma.done.wait (%p4327_p6), [#allocation36], 528   ;;  %p4328_p9 = pmov %p4321_p0 }
 0x294   : > { %p4329_p3 = pmov %p4321_p0 }
 0x295   : > { %3276 = vsyncadd (%p4328_p9), [#allocation36], 4294966768 }
 0x296   : > { %3278 = dma.done.wait (%p4329_p3), [#allocation39], 16   ;;  %p4330_p11 = pmov %p4321_p0 }
 0x297   : > { %v962_v0 = vld [vmem:[%s815_s17] sm:$0xf]  ;;  %vm966_vm0 = vcmask 261120   ;;  %v4029_v2 = vld [vmem:[%s3977_s15] sm:$0xff]  ;;  %v3335_v18 = vmov 0.0   ;;  %v2581_v20 = vld [vmem:[#allocation20 + $0x8] sm:$0xff]  }
 0x298   : > { %3280 = vsyncadd (%p4330_p11), [#allocation39], 4294967280  ;;  %v963_v1 = vunpack.c.l.bf16 %v962_v0  ;;  %v1177_v4 = vsel %vm966_vm0, %v4029_v2, 0.0  ;;  %v1301_v15 = vld [vmem:[%s823_s7] sm:$0x1]  ;;  %v2580_v17 = vld [vmem:[#allocation23] sm:$0xff]   ;;  %2244 = vmatprep.subr.bf16.mxu0 %v3335_v18  ;;  %2252 = vmatprep.subr.bf16.mxu1 %v3335_v18 }
 0x299   : > { %v2579_v16 = vld [vmem:[#allocation20] sm:$0xff]   ;;  %vm1302_vm1 = vcmp.eq.f32.partialorder %v1301_v15, 0.0  ;;  %2253 = vmatpush3.bf16.msra.mxu1 %v2580_v17  ;;  %vm3336_vm2 = vmmov 0   ;;  %v2166_v38 = vld [vmem:[#allocation14] ss:$0 sm:$0xff]  ;;  %v2583_v46 = vld [vmem:[#allocation17] sm:$0xff]  }
 0x29a   : > { %v967_v3 = vsel %vm966_vm0, %v963_v1, 0.0  ;;  %v4042_v19 = vsel %vm1302_vm1, -1e+09, %v3335_v18  ;;  %2245 = vmatpush3.bf16.msra.mxu0 %v2579_v16  ;;  %v2582_v21 = vld [vmem:[#allocation23 + $0x8] sm:$0xff]   ;;  %2254 = vmatprep.subr.bf16.mxu1 %v3335_v18  ;;  %v2167_v41 = vld [vmem:[#allocation16] ss:$0 sm:$0xff] }
 0x29b   : > { %968 = vadd.xlane.f32.xlu0 %v967_v3  ;;  %2246 = vmatprep.subr.bf16.mxu0 %v3335_v18  ;;  %v2584_v49 = vld [vmem:[#allocation17 + $0x8] sm:$0xff]   ;;  %v2168_v52 = vld [vmem:[#allocation22] ss:$0 sm:$0xff]  ;;  %v2172_v53 = vld [vmem:[#allocation25] ss:$0 sm:$0xff]  ;;  %vm1134_vm7 = vcmask 60416  }
 0x29c   : > { %2248 = vmatprep.mubr.msk.bf16.mxu0 %vm3336_vm2, %v3335_v18  ;;  %2256 = vmatprep.mubr.msk.bf16.mxu1 %vm3336_vm2, %v3335_v18  ;;  %s3337_s3 = smov 120   ;;  %v2180_v3 = vld [vmem:[#allocation19] ss:$0 sm:$0xff]  ;;  %s3338_s28 = smov 104  }
 0x29d   : > { %2255 = vmatpush3.bf16.msra.mxu1 %v2582_v21  ;;  %s3339_s20 = smov 112   ;;  %s4071_s19 = scalar_lea.vmem [#allocation40], %s2147_s18 }
 0x29e   : > { %2247 = vmatpush3.bf16.msra.mxu0 %v2581_v20  ;;  %s4073_s6 = smov 0  }
 0x29f   : > { %1178 = vadd.xlane.f32.xlu0 %v1177_v4  ;;  %2260 = vmatprep.subr.bf16.mxu0 %v3335_v18 }
 0x328   : > { %v969_v5 = vpop.xlane.xlu0 %968 }
 0x329   : > { %v971_v6 = vmul.f32 0.03125, %v969_v5 }
 0x32b   : > { %v972_v7 = vsub.f32 %v963_v1, %v971_v6 }
 0x32c   : > { %v1179_v8 = vpop.xlane.xlu0 %1178 }
 0x32d   : > { %v1181_v9 = vmul.f32 0.03125, %v1179_v8  ;;  %v973_v10 = vmul.f32 %v972_v7, %v972_v7 }
 0x32f   : > { %v1182_v11 = vsub.f32 %v4029_v2, %v1181_v9  ;;  %v974_v12 = vsel %vm966_vm0, %v973_v10, 0.0 }
 0x330   : > { %975 = vadd.xlane.f32.xlu1 %v974_v12 }
 0x331   : > { %v1183_v13 = vmul.f32 %v1182_v11, %v1182_v11 }
 0x333   : > { %v1184_v14 = vsel %vm966_vm0, %v1183_v13, 0.0 }
 0x334   : > { %1185 = vadd.xlane.f32.xlu1 %v1184_v14 }
 0x3bd   : > { %v976_v22 = vpop.xlane.xlu1 %975 }
 0x3be   : > { %v977_v23 = vmul.f32 0.032258064, %v976_v22 }
 0x3c0   : > { %2585 = vrsqrt.f32 %v977_v23  ;;  %vm980_vm3 = vcmp.eq.f32.partialorder %v977_v23, inf  ;;  %v983_v28 = vand.u32 2147483648, %v977_v23  ;;  %vm982_vm4 = vcmp.eq.f32.partialorder %v977_v23, 0.0 }
 0x3c1   : > { %v1186_v24 = vpop.xlane.xlu1 %1185 }
 0x3c2   : > { %v1187_v25 = vmul.f32 0.032258064, %v1186_v24 }
 0x3c4   : > { %2587 = vrsqrt.f32 %v1187_v25  ;;  %vm1190_vm5 = vcmp.eq.f32.partialorder %v1187_v25, inf  ;;  %v1193_v34 = vand.u32 2147483648, %v1187_v25  ;;  %vm1192_vm6 = vcmp.eq.f32.partialorder %v1187_v25, 0.0 }
 0x3ca   : > { %v2586_v26 = vpop.eup %2585 }
 0x3cb   : > { %v979_v27 = vmul.f32 %v2586_v26, %v977_v23 }
 0x3cd   : > { %v981_v29 = vsel %vm980_vm3, %v977_v23, %v979_v27 }
 0x3ce   : > { %v2588_v30 = vpop.eup %2587  ;;  %v984_v31 = vsel %vm982_vm4, %v983_v28, %v981_v29 }
 0x3cf   : > { %v985_v32 = vadd.f32 1e-06, %v984_v31  ;;  %v1189_v33 = vmul.f32 %v2588_v30, %v1187_v25 }
 0x3d1   : > { %2589 = vrcp.f32 %v985_v32  ;;  %v1191_v35 = vsel %vm1190_vm5, %v1187_v25, %v1189_v33 }
 0x3d2   : > { %v1194_v36 = vsel %vm1192_vm6, %v1193_v34, %v1191_v35 }
 0x3d3   : > { %v1195_v37 = vadd.f32 1e-06, %v1194_v36 }
 0x3d5   : > { %2591 = vrcp.f32 %v1195_v37 }
 0x3db   : > { %v2590_v39 = vpop.eup %2589 }
 0x3dc   : > { %v993_v40 = vmul.f32 %v2590_v39, %v2166_v38 }
 0x3de   : > { %v994_v42 = vmul.f32 %v993_v40, %v972_v7 }
 0x3df   : > { %v2592_v43 = vpop.eup %2591 }
 0x3e0   : > { %v1001_v44 = vadd.f32 %v2167_v41, %v994_v42  ;;  %v1203_v45 = vmul.f32 %v2592_v43, %v2166_v38 }
 0x3e2   : > { %v1002_v47 = vpack.c.bf16 %v1001_v44, %v1001_v44  ;;  %v1204_v48 = vmul.f32 %v1203_v45, %v1182_v11 }
 0x3e4   : > { %2249 = vmatmul.mubr.msk.bf16.vlgmr.msra.gmra.mrb[0].mxu0 %vm966_vm0, %v1002_v47  ;;  %2257 = vmatmul.mubr.msk.bf16.vlgmr.msra.gmra.mrb[0].mxu1 %vm966_vm0, %v1002_v47  ;;  %v1211_v50 = vadd.f32 %v2167_v41, %v1204_v48 }
 0x3e5   : > { %2261 = vmatpush3.bf16.msra.mxu0 %v2583_v46  ;;  %2264 = vmatprep.mubr.msk.bf16.mxu0 %vm3336_vm2, %v3335_v18 }
 0x3e6   : > { %2262 = vmatprep.subr.bf16.mxu0 %v3335_v18  ;;  %v1212_v51 = vpack.c.bf16 %v1211_v50, %v1211_v50 }
 0x3e9   : > { %2263 = vmatpush3.bf16.msra.mxu0 %v2584_v49 }
 0x3ec   : > { %2265 = vmatmul.mubr.msk.bf16.vlgmr.msra.gmra.mrb[4].mxu0 %vm966_vm0, %v1212_v51 }
 0x4b7   : > { %v1063_v54 = vpop.f32.mrb[0].mxu0  ;;  %v1127_v55 = vpop.f32.mrb[0].mxu1 }
 0x4b8   : > { %v1064_v56 = vadd.f32 %v2168_v52, %v1063_v54  ;;  %v1128_v57 = vadd.f32 %v2172_v53, %v1127_v55  ;;  %v2250_v58 = vpop.f32.mrb[1].mxu0  ;;  %v2258_v59 = vpop.f32.mrb[1].mxu1 }
 0x4b9   : > { %v1066_v60 = vpop.f32.mrb[2].mxu0  ;;  %v1130_v61 = vpop.f32.mrb[2].mxu1 }
 0x4ba   : > { %v1069_v62 = vpack.c.bf16 %v1064_v56, %v1064_v56  ;;  %v1133_v63 = vpack.c.bf16 %v1128_v57, %v1128_v57  ;;  %v2251_v0 = vpop.f32.mrb[3].mxu0  ;;  %v2259_v1 = vpop.f32.mrb[3].mxu1 }
 0x4bc   : > { %1135 = vst.msk [vmem:[#allocation2] sm:$0xf] %vm1134_vm7, %v1069_v62  ;;  %1136 = vst.msk [vmem:[#allocation3] sm:$0xf] %vm1134_vm7, %v1133_v63  ;;  %1140 = vrot.lane.b32.xlu0 %v1069_v62, %s3337_s3  ;;  %1148 = vrot.lane.b32.xlu1 %v1133_v63, %s3337_s3 }
 0x4bf   : > { %v1273_v4 = vpop.f32.mrb[4].mxu0 }
 0x4c0   : > { %v1274_v5 = vadd.f32 %v2180_v3, %v1273_v4  ;;  %1163 = vrot.lane.b32.xlu0 %v1069_v62, %s3338_s28  ;;  %1153 = vrot.lane.b32.xlu1 %v1069_v62, %s3339_s20  ;;  %v2266_v6 = vpop.f32.mrb[5].mxu0 }
 0x4c1   : > { %v1276_v7 = vpop.f32.mrb[6].mxu0 }
 0x4c2   : > { %v1279_v8 = vmul.f32 0.35355338, %v1274_v5  ;;  %v2267_v9 = vpop.f32.mrb[7].mxu0 }
 0x4c4   : > { %v1280_v10 = vpack.c.bf16 %v1279_v8, %v1279_v8  ;;  %1158 = vrot.lane.b32.xlu1 %v1133_v63, %s3339_s20 }
 0x4c6   : > { %1282 = vst.msk [vmem:[#allocation4] sm:$0xf] %vm1134_vm7, %v1280_v10  ;;  %1286 = vrot.lane.b32.xlu0 %v1280_v10, %s3337_s3 }
 0x4c8   : > { %1168 = vrot.lane.b32.xlu1 %v1133_v63, %s3338_s28 }
 0x4ca   : > { %1296 = vrot.lane.b32.xlu0 %v1280_v10, %s3338_s28 }
 0x4cc   : > { %1291 = vrot.lane.b32.xlu1 %v1280_v10, %s3339_s20 }
 0x52e   : > { %v1149_v11 = vpop.permute.xlu1 %1148  ;;  %v1141_v12 = vpop.permute.xlu0 %1140 }
 0x52f   : > { %1152 = vst.msk [vmem:[#allocation3 + $0x4] sm:$0xf] %vm1134_vm7, %v1149_v11  ;;  %1144 = vst.msk [vmem:[#allocation2 + $0x4] sm:$0xf] %vm1134_vm7, %v1141_v12 }
 0x532   : > { %v1154_v13 = vpop.permute.xlu1 %1153  ;;  %v1164_v14 = vpop.permute.xlu0 %1163 }
 0x533   : > { %1157 = vst.msk [vmem:[#allocation2 + $0x8] sm:$0xf] %vm1134_vm7, %v1154_v13  ;;  %1167 = vst.msk [vmem:[#allocation2 + $0xc] sm:$0xf] %vm1134_vm7, %v1164_v14 }
 0x536   : > { %v1159_v15 = vpop.permute.xlu1 %1158 }
 0x537   : > { %1162 = vst.msk [vmem:[#allocation3 + $0x8] sm:$0xf] %vm1134_vm7, %v1159_v15 }
 0x538   : > { %v1287_v16 = vpop.permute.xlu0 %1286 }
 0x539   : > { %1290 = vst.msk [vmem:[#allocation4 + $0x4] sm:$0xf] %vm1134_vm7, %v1287_v16 }
 0x53a   : > { %v1169_v17 = vpop.permute.xlu1 %1168 }
 0x53b   : > { %1172 = vst.msk [vmem:[#allocation3 + $0xc] sm:$0xf] %vm1134_vm7, %v1169_v17 }
 0x53c   : > { %v1297_v20 = vpop.permute.xlu0 %1296 }
 0x53d   : > { %1300 = vst.msk [vmem:[#allocation4 + $0xc] sm:$0xf] %vm1134_vm7, %v1297_v20 }
 0x53e   : > { %v1292_v21 = vpop.permute.xlu1 %1291 }
 0x53f   : > { %1295 = vst.msk [vmem:[#allocation4 + $0x8] sm:$0xf] %vm1134_vm7, %v1292_v21 }
 0x540 LB: >> { %v3340_v22 = vmov 0.0   ;;  %vm3341_vm8 = vmmov 0   ;;  %s4079_s21 = sshll.u32 %s3311_s6, 2  ;;  %vm1322_vm9 = vcmask 64512   ;;  %v1317_v26 = vlaneseq  ;;  %s1309_s6 = sadd.s32 1, %s3311_s6   ;;  %s3311_s6 = sphi %s4073_s6, %s1309_s6  }
 0x541   : >> { %2268 = vmatprep.subr.bf16.mxu0 %v3340_v22  ;;  %2270 = vmatprep.mubr.msk.bf16.mxu0 %vm3341_vm8, %v3340_v22  ;;  %s1314_s8 = scalar_lea.vmem [#allocation2], %s4079_s21  ;;  %s1311_s26 = scalar_lea.vmem [#allocation4], %s4079_s21  ;;  %vm1385_vm10 = vcmask 1043456  }
 0x542   : >> { %2274 = vmatprep.subr.bf16.mxu1 %v3340_v22  ;;  %2276 = vmatprep.mubr.msk.bf16.mxu1 %vm3341_vm8, %v3340_v22  ;;  %v1315_v23 = vld [vmem:[%s1314_s8] sm:$0xf]  ;;  %v1318_v27 = vshrl.u32 %v1317_v26, 7  ;;  %s1380_s29 = scalar_lea.vmem [#allocation3], %s4079_s21  ;;  %s1433_s9 = scalar_lea.vmem [#allocation5], %s4079_s21 }
 0x543   : >> { %v1327_v24 = vsel %vm1322_vm9, %v1315_v23, 0  ;;  %v1381_v36 = vld [vmem:[%s1380_s29] sm:$0xf]  ;;  %p1306_p12 = scmp.ge.s32.totalorder %s1309_s6, 4  }
 0x544   : >> { %2269 = vmatpush3.bf16.xpose.msra.mxu0 %v1327_v24  ;;  %v1319_v28 = vsub.s32 0, %v1318_v27  ;;  %v1387_v37 = vsel %vm1385_vm10, %v1381_v36, 0  ;;  %s3342_s30 = smov (%p1306_p12), 8   ;;  %s3343_s0 = smov (%p1306_p12), 24   ;;  %v2598_v56 = vld [vmem:[#allocation26 + $0x8] sm:$0xff] (%p1306_p12)   ;;  %vm1443_vm11 = vcmask (%p1306_p12), 126016  }
 0x545   : >> { %2275 = vmatpush3.bf16.msra.mxu1 %v1387_v37  ;;  %2280 = vmatprep.subr.bf16.mxu0 (%p1306_p12), %v3335_v18  ;;  %s3344_s4 = smov (%p1306_p12), 16   ;;  %vm1451_vm12 = vcmask (%p1306_p12), 191616   ;;  %vm1459_vm13 = vcmask (%p1306_p12), 257216   ;;  %v2191_v61 = vld [vmem:[#allocation28] ss:$0 sm:$0xff] (%p1306_p12)  ;;  %vm1535_vm14 = vcmask (%p1306_p12), 257024  }
 0x546   : >> { %v1312_v25 = vld [vmem:[%s1311_s26] sm:$0xf]  ;;  %v1320_v29 = vrot.slane %v4042_v19, %v1319_v28  ;;  %2288 = vmatprep.subr.bf16.mxu1 (%p1306_p12), %v3335_v18  ;;  %v2599_v20 = vld [vmem:[#allocation32] sm:$0xff] (%p1306_p12)   ;;  %v2600_v21 = vld [vmem:[#allocation34] sm:$0xff] (%p1306_p12)   ;;  %s4331_s5 = sld [smem:[#allocation53_spill]] (%p1306_p12)  ;;  %s1824_s10 = sshll.u32 (%p1306_p12), %s4071_s19, 4  ;;  %s4140_s10 = int_to_ptr.vmem [resolvable:$true] %s1824_s10 }
 0x547   : > { %v2597_v19 = vld [vmem:[#allocation26] sm:$0xff] (%p1306_p12)   ;;  %v2602_v23 = vld [vmem:[#allocation34 + $0x8] sm:$0xff] (%p1306_p12)   ;;  %s4332_s17 = sld [smem:[#allocation77_spill]] (%p1306_p12)  ;;  %s1810_s3 = scalar_lea.sflag (%p1306_p12), [#allocation10], %s3973_s13 }
 0x548   : > { %v2601_v22 = vld [vmem:[#allocation32 + $0x8] sm:$0xff] (%p1306_p12)   ;;  %s3181_s28 = scalar_lea.vmem (%p1306_p12), %s4140_s10, 64  ;;  %p4333_p13 = scmp.ne.s32.totalorder (%p1306_p12), %s4286_s24, 0 }
 0x549   : > { %p3182_p8 = scmp.ne.s32.totalorder (%p1306_p12), %s4140_s10, %s3181_s28  ;;  %s3345_s20 = smov (%p1306_p12), [#allocation40]  }
 0x54a   : > { %s3185_s6 = sshll.u32 (%p1306_p12), %s3345_s20, 4  ;;  %s3186_s6 = int_to_ptr.vmem [resolvable:$false] %s3185_s6 }
 0x54b   : >> { %2271 = vmatmul.mubr.msk.bf16.vlgmr.msra.gmra.mrb[0].mxu0 %vm1322_vm9, %v1312_v25  ;;  %p3183_p5 = pnand (%p1306_p12), %p3182_p8, %p4333_p13  ;;  %s3187_s21 = scalar_lea.vmem (%p1306_p12), %s3186_s6, 128 }
 0x54c   : > { %2284 = vmatprep.mubr.msk.bf16.mxu0 (%p1306_p12), %vm3336_vm2, %v3335_v18  ;;  %2281 = vmatpush3.bf16.msra.mxu0 (%p1306_p12), %v2597_v19  ;;  %s2211_s15 = sshll.u32 (%p1306_p12), %s4331_s5, 6  ;;  %p3188_p4 = scmp.lt.s32.totalorder (%p1306_p12), %s4140_s10, %s3186_s6 }
 0x54d   : > { %2282 = vmatprep.subr.bf16.mxu0 (%p1306_p12), %v3335_v18  ;;  %s4138_s7 = scalar_lea.hbm (%p1306_p12), %s4332_s17, %s2211_s15  ;;  %p3184_p0 = pneg (%p1306_p12), %p3183_p5 }
 0x54e   : > { %p3189_p2 = scmp.lt.s32.totalorder (%p1306_p12), %s3187_s21, %s3181_s28 }
 0x550   : > { %2283 = vmatpush3.bf16.msra.mxu0 (%p1306_p12), %v2598_v56  ;;  %p3190_p7 = por (%p1306_p12), %p3189_p2, %p3188_p4 }
 0x551   : > { %2296 = vmatprep.subr.bf16.mxu0 (%p1306_p12), %v3335_v18 }
 0x552   : > { %p3191_p10 = pnand (%p1306_p12), %p3190_p7, %p3184_p0 }
 0x61e   : >> { %v1363_v30 = vpop.f32.mrb[0].mxu0 }
 0x61f   : >> { %v1364_v31 = vadd.f32 %v1363_v30, %v1320_v29  ;;  %v2272_v32 = vpop.f32.mrb[1].mxu0 }
 0x620   : >> { %v1366_v33 = vpop.f32.mrb[2].mxu0 }
 0x621   : >> { %v2273_v34 = vpop.f32.mrb[3].mxu0  ;;  %v1369_v35 = vsel %vm1322_vm9, %v1364_v31, -inf }
 0x622   : >> { %1370 = vmax.xlane.f32.xlu0 %v1369_v35 }
 0x6af   : >> { %v1371_v38 = vpop.xlane.xlu0 %1370 }
 0x6b0   : >> { %v1372_v39 = vsub.f32 %v1364_v31, %v1371_v38 }
 0x6b2   : >> { %v1373_v40 = vmul.f32 1.442695, %v1372_v39 }
 0x6b4   : >> { %2593 = vpow2.f32 %v1373_v40  ;;  %v2195_v40 = vld [vmem:[#allocation29] ss:$0 sm:$0xff] (%p1306_p12) }
 0x6be   : >> { %v2594_v41 = vpop.eup %2593 }
 0x6bf   : >> { %v1375_v42 = vsel %vm1322_vm9, %v2594_v41, 0.0  ;;  %v1378_v43 = vpack.c.bf16 %v2594_v41, %v2594_v41 }
 0x6c0   : >> { %1376 = vadd.xlane.f32.xlu0 %v1375_v42 }
 0x6c1   : >> { %2277 = vmatmul.mubr.msk.bf16.vlgmr.msra.gmra.mrb[0].mxu1 %vm1322_vm9, %v1378_v43 }
 0x6c2   : > { %2292 = vmatprep.mubr.msk.bf16.mxu1 (%p1306_p12), %vm3336_vm2, %v3335_v18  ;;  %2289 = vmatpush3.bf16.msra.mxu1 (%p1306_p12), %v2600_v21 }
 0x6c3   : > { %2290 = vmatprep.subr.bf16.mxu1 (%p1306_p12), %v3335_v18 }
 0x6c6   : > { %2291 = vmatpush3.bf16.msra.mxu1 (%p1306_p12), %v2602_v23 }
 0x6c7   : > { %2304 = vmatprep.subr.bf16.mxu1 (%p1306_p12), %v3335_v18 }
 0x74d   : >> { %v1377_v44 = vpop.xlane.xlu0 %1376 }
 0x74e   : >> { %2595 = vrcp.f32 %v1377_v44  ;;  %v2196_v44 = vld [vmem:[#allocation31] ss:$0 sm:$0xff] (%p1306_p12) }
 0x758   : >> { %v2596_v45 = vpop.eup %2595 }
 0x793   : > { %1308 = sbr.rel (!%p1306_p12) target bundleno = 1344 (0x540), region = 265 }
 0x794   : >> { %v1423_v46 = vpop.f32.mrb[0].mxu1 }
 0x795   : >> { %v1430_v47 = vmul.f32 %v2596_v45, %v1423_v46  ;;  %v2278_v48 = vpop.f32.mrb[1].mxu1 }
 0x796   : >> { %v1426_v49 = vpop.f32.mrb[2].mxu1 }
 0x797   : >> { %v1431_v50 = vpack.c.bf16 %v1430_v47, %v1430_v47  ;;  %v2279_v51 = vpop.f32.mrb[3].mxu1 }
 0x798   : > { %v2603_v51 = vld [vmem:[#allocation37] sm:$0xff] (%p1306_p12)  }
 0x799   : >> { %1434 = vst.msk [vmem:[%s1433_s9] sm:$0xf] %vm1134_vm7, %v1431_v50 }
 0x7a0   : > { %v1438_v52 = vld [vmem:[#allocation5 + $0x4] sm:$0xf]  ;;  %v1446_v53 = vld [vmem:[#allocation5 + $0x8] sm:$0xf]  ;;  %v1454_v54 = vld [vmem:[#allocation5 + $0xc] sm:$0xf] }
 0x7a1   : > { %1440 = vrot.lane.b32.xlu0 %v1438_v52, %s3342_s30  ;;  %v1435_v55 = vld [vmem:[#allocation5] sm:$0xf]  ;;  %1456 = vrot.lane.b32.xlu1 %v1454_v54, %s3343_s0  ;;  %v2605_v54 = vld [vmem:[#allocation37 + $0x10] sm:$0xff]  }
 0x7a2   : > { %1436 = vst.msk [vmem:[#allocation6] sm:$0xf] %vm1134_vm7, %v1435_v55  ;;  %v2606_v55 = vld [vmem:[#allocation37 + $0x18] sm:$0xff]  }
 0x7a5   : > { %1448 = vrot.lane.b32.xlu0 %v1446_v53, %s3344_s4  ;;  %v2604_v53 = vld [vmem:[#allocation37 + $0x8] sm:$0xff]  }
 0x813   : > { %v1441_v57 = vpop.permute.xlu0 %1440  ;;  %v1457_v58 = vpop.permute.xlu1 %1456 }
 0x814   : > { %1444 = vst.msk [vmem:[#allocation6] sm:$0xf] %vm1443_vm11, %v1441_v57  ;;  %v2203_v57 = vld [vmem:[#allocation35] ss:$0 sm:$0xff] }
 0x817   : > { %v1449_v59 = vpop.permute.xlu0 %1448 }
 0x818   : > { %1452 = vst.msk [vmem:[#allocation6] sm:$0xf] %vm1451_vm12, %v1449_v59 }
 0x819   : > { %1460 = vst.msk [vmem:[#allocation6] sm:$0xf] %vm1459_vm13, %v1457_v58 }
 0x820   : > { %v1461_v60 = vld [vmem:[#allocation6] sm:$0xf] }
 0x821   : > { %2285 = vmatmul.mubr.msk.bf16.vlgmr.msra.gmra.mrb[0].mxu0 %vm966_vm0, %v1461_v60 }
 0x822   : > { %2300 = vmatprep.mubr.msk.bf16.mxu0 %vm3336_vm2, %v3335_v18  ;;  %2297 = vmatpush3.bf16.msra.mxu0 %v2599_v20 }
 0x823   : > { %2298 = vmatprep.subr.bf16.mxu0 %v3335_v18 }
 0x826   : > { %2299 = vmatpush3.bf16.msra.mxu0 %v2601_v22 }
 0x8f4   : > { %v1522_v62 = vpop.f32.mrb[0].mxu0 }
 0x8f5   : > { %v1523_v63 = vadd.f32 %v2191_v61, %v1522_v62  ;;  %v2286_v0 = vpop.f32.mrb[1].mxu0 }
 0x8f6   : > { %v1525_v1 = vpop.f32.mrb[2].mxu0 }
 0x8f7   : > { %v1528_v3 = vadd.f32 %v1523_v63, %v4029_v2  ;;  %v2287_v4 = vpop.f32.mrb[3].mxu0 }
 0x8f9   : > { %1529 = vst.msk [vmem:[#allocation7] sm:$0xff] %vm966_vm0, %v1528_v3 }
 0x900   : > { %v4109_v5 = vld [vmem:[#allocation7 + $0x1] ss:$2 sm:$0xf]  ;;  %v4111_v6 = vld [vmem:[#allocation7] ss:$2 sm:$0xf] }
 0x901   : > { %v1571_v7 = vsel %vm1535_vm14, %v4109_v5, 0.0  ;;  %v1536_v8 = vsel %vm1535_vm14, %v4111_v6, 0.0 }
 0x902   : > { %1572 = vadd.xlane.f32.xlu0 %v1571_v7  ;;  %1537 = vadd.xlane.f32.xlu1 %v1536_v8  ;;  %v2204_v7 = vld [vmem:[#allocation38] ss:$0 sm:$0xff] }
 0x98f   : > { %v1573_v9 = vpop.xlane.xlu0 %1572  ;;  %v1538_v10 = vpop.xlane.xlu1 %1537 }
 0x990   : > { %v1574_v11 = vmul.f32 0.03125, %v1573_v9  ;;  %v1539_v2 = vmul.f32 0.03125, %v1538_v10 }
 0x992   : > { %v1575_v12 = vsub.f32 %v4109_v5, %v1574_v11  ;;  %v1540_v13 = vsub.f32 %v4111_v6, %v1539_v2 }
 0x994   : > { %v1576_v14 = vmul.f32 %v1575_v12, %v1575_v12  ;;  %v1541_v15 = vmul.f32 %v1540_v13, %v1540_v13 }
 0x996   : > { %v1577_v16 = vsel %vm1535_vm14, %v1576_v14, 0.0  ;;  %v1542_v17 = vsel %vm1535_vm14, %v1541_v15, 0.0 }
 0x997   : > { %1578 = vadd.xlane.f32.xlu1 %v1577_v16  ;;  %1543 = vadd.xlane.f32.xlu0 %v1542_v17 }
 0xa24   : > { %v1544_v24 = vpop.xlane.xlu0 %1543  ;;  %v1579_v25 = vpop.xlane.xlu1 %1578 }
 0xa25   : > { %v1545_v26 = vmul.f32 0.032258064, %v1544_v24  ;;  %v1580_v27 = vmul.f32 0.032258064, %v1579_v25 }
 0xa27   : > { %2607 = vrsqrt.f32 %v1545_v26  ;;  %vm1548_vm15 = vcmp.eq.f32.partialorder %v1545_v26, inf  ;;  %v1551_v31 = vand.u32 2147483648, %v1545_v26  ;;  %vm1550_vm1 = vcmp.eq.f32.partialorder %v1545_v26, 0.0 }
 0xa28   : > { %2609 = vrsqrt.f32 %v1580_v27  ;;  %vm1583_vm3 = vcmp.eq.f32.partialorder %v1580_v27, inf  ;;  %v1586_v34 = vand.u32 2147483648, %v1580_v27  ;;  %vm1585_vm4 = vcmp.eq.f32.partialorder %v1580_v27, 0.0 }
 0xa31   : > { %v2608_v28 = vpop.eup %2607 }
 0xa32   : > { %v2610_v29 = vpop.eup %2609  ;;  %v1547_v30 = vmul.f32 %v2608_v28, %v1545_v26 }
 0xa33   : > { %v1582_v32 = vmul.f32 %v2610_v29, %v1580_v27 }
 0xa34   : > { %v1549_v33 = vsel %vm1548_vm15, %v1545_v26, %v1547_v30 }
 0xa35   : > { %v1552_v35 = vsel %vm1550_vm1, %v1551_v31, %v1549_v33  ;;  %v1584_v36 = vsel %vm1583_vm3, %v1580_v27, %v1582_v32 }
 0xa36   : > { %v1553_v37 = vadd.f32 1e-06, %v1552_v35  ;;  %v1587_v38 = vsel %vm1585_vm4, %v1586_v34, %v1584_v36 }
 0xa37   : > { %v1588_v39 = vadd.f32 1e-06, %v1587_v38 }
 0xa38   : > { %2611 = vrcp.f32 %v1553_v37 }
 0xa39   : > { %2613 = vrcp.f32 %v1588_v39 }
 0xa42   : > { %v2612_v41 = vpop.eup %2611 }
 0xa43   : > { %v2614_v42 = vpop.eup %2613  ;;  %v1561_v43 = vmul.f32 %v2612_v41, %v2195_v40 }
 0xa44   : > { %v1590_v45 = vmul.f32 %v2614_v42, %v2195_v40 }
 0xa45   : > { %v1562_v46 = vmul.f32 %v1561_v43, %v1540_v13 }
 0xa46   : > { %v1591_v47 = vmul.f32 %v1590_v45, %v1575_v12 }
 0xa47   : > { %v1569_v48 = vadd.f32 %v2196_v44, %v1562_v46 }
 0xa48   : > { %v1592_v49 = vadd.f32 %v2196_v44, %v1591_v47 }
 0xa49   : > { %v1570_v50 = vpack.c.bf16 %v1569_v48, %v1569_v48 }
 0xa4a   : > { %v1593_v52 = vpack.c.bf16 %v1592_v49, %v1592_v49 }
 0xa4b   : > { %2301 = vmatmul.mubr.msk.bf16.vlgmr.msra.gmra.mrb[4].mxu0 %vm966_vm0, %v1570_v50 }
 0xa4c   : > { %2293 = vmatmul.mubr.msk.bf16.vlgmr.msra.gmra.mrb[0].mxu1 %vm966_vm0, %v1593_v52  ;;  %vm1761_vm0 = vcmask 523264  }
 0xa4d   : > { %2305 = vmatpush3.bf16.msra.mxu1 %v2603_v51  ;;  %2312 = vmatprep.mubr.msk.bf16.mxu1 %vm3336_vm2, %v3335_v18 }
 0xa4e   : > { %2306 = vmatprep.subr.bf16.mxu1 %v3335_v18 }
 0xa51   : > { %2307 = vmatpush3.bf16.msra.mxu1 %v2604_v53 }
 0xa52   : > { %2308 = vmatprep.subr.bf16.mxu1 %v3335_v18 }
 0xa55   : > { %2309 = vmatpush3.bf16.msra.mxu1 %v2605_v54 }
 0xa56   : > { %2310 = vmatprep.subr.bf16.mxu1 %v3335_v18  ;;  %v1805_v18 = vadd.f32 %v4109_v5, %v4111_v6 }
 0xa58   : > { %v1806_v10 = vmul.f32 0.5, %v1805_v18 }
 0xa59   : > { %2311 = vmatpush3.bf16.msra.mxu1 %v2606_v55 }
 0xb1e   : > { %v1706_v19 = vpop.f32.mrb[4].mxu0 }
 0xb1f   : > { %v1651_v56 = vpop.f32.mrb[0].mxu1  ;;  %v2302_v58 = vpop.f32.mrb[5].mxu0 }
 0xb20   : > { %v1707_v59 = vadd.f32 %v1706_v19, %v1651_v56  ;;  %v2294_v60 = vpop.f32.mrb[1].mxu1  ;;  %v1709_v61 = vpop.f32.mrb[6].mxu0 }
 0xb21   : > { %v1654_v62 = vpop.f32.mrb[2].mxu1  ;;  %v2303_v63 = vpop.f32.mrb[7].mxu0 }
 0xb22   : > { %v1719_v0 = vadd.f32 %v2203_v57, %v1707_v59  ;;  %v2295_v1 = vpop.f32.mrb[3].mxu1 }
 0xb24   : > { %v1720_v3 = vmax.f32 %v1719_v0, 0.0 }
 0xb26   : > { %v1721_v4 = vpack.c.bf16 %v1720_v3, %v1720_v3 }
 0xb28   : > { %2313 = vmatmul.mubr.msk.bf16.vlgmr.msra.gmra.mrb[4].mxu1 %vm1761_vm0, %v1721_v4 }
 0xbfb   : > { %v1799_v8 = vpop.f32.mrb[4].mxu1 }
 0xbfc   : > { %v1800_v9 = vadd.f32 %v2204_v7, %v1799_v8  ;;  %v2314_v11 = vpop.f32.mrb[5].mxu1 }
 0xbfd   : > { %v1802_v2 = vpop.f32.mrb[6].mxu1 }
 0xbfe   : > { %v1807_v12 = vadd.f32 %v1806_v10, %v1800_v9  ;;  %v2315_v13 = vpop.f32.mrb[7].mxu1 }
 0xc00   : > { %1808 = vst.msk [vmem:[%s4071_s19] sm:$0xf] %vm1535_vm14, %v1807_v12 }
 0xc01   : > { %3194 = shalt.err (!%p3191_p10)
}
 0xc02   : > { %s3195_s13 = scalar_lea.hbm %s4138_s7, 64  ;;  %s3199_s26 = scalar_lea.hbm %s4332_s17, 128 }
 0xc03   : > { %p3196_p1 = scmp.ne.s32.totalorder %s4138_s7, %s3195_s13  ;;  %p3200_p3 = scmp.lt.u32.totalorder %s4138_s7, %s4332_s17 }
 0xc04   : > { %p3201_p11 = scmp.lt.u32.totalorder %s3199_s26, %s3195_s13  ;;  %p3203_p8 = scmp.lt.u32.totalorder %s3195_s13, %s4138_s7 }
 0xc05   : > { %p3197_p6 = pnand %p3196_p1, %p4333_p13 }
 0xc06   : > { %p3202_p12 = por %p3201_p11, %p3200_p3 }
 0xc07   : > { %p3198_p9 = pneg %p3197_p6 }
 0xc08   : > { %p3204_p5 = por %p3203_p8, %p3202_p12 }
 0xc0a   : > { %p3205_p0 = pnand %p3204_p5, %p3198_p9 }
 0xc0c   : > { %3208 = shalt.err (!%p3205_p0)
}
 0xc0d   : > { %2390 = dma.vmem_to_hbm [thread:$0]  (%p4333_p13), %s4140_s10, 64, %s4138_s7, %s1810_s3  }
 0xc0e PF: > { %s1836_s30 = sand.u32 1, %s3287_s1   ;;  %p4334_p4 = scmp.ne.s32.totalorder %s4288_s16, 0 }
 0xc0f   : > { %p4335_p2 = scmp.ge.s32.totalorder %s3307_s25, 2  ;;  %s1837_s0 = scalar_lea.sflag [#allocation10], %s1836_s30 }
 0xc11   : > { %p2455_p7 = pnand %p4335_p2, %p4334_p4 }
 0xc13   : > { %3282 = dma.done.wait (!%p2455_p7), %s1837_s0, 64  }
 0xc14   : > { %3284 = vsyncadd (!%p2455_p7), %s1837_s0, 4294967232  ;;  %s48_s25 = sadd.s32 1, %s3307_s25   ;;  %s4336_s24 = sld [smem:[#allocation56_spill]] }
 0xc15   : > { %p45_p10 = scmp.ge.s32.totalorder %s48_s25, 4   ;;  %s4337_s4 = sld [smem:[#allocation55_spill]] }
 0xc16   : > { %s4338_s1 = smov %s3291_s22  ;;  %s4339_s22 = smov %s3295_s23 }
 0xc17   :  { %47 = sbr.rel (!%p45_p10) target bundleno = 39 (0x27), region = 276 }
 0xc1a   : > { %s4340_s23 = smov %s4336_s24  ;;  %s4341_s24 = smov %s3303_s2 }
 0xc1b   : > { %s4342_s2 = smov %s4337_s4 }
 0xc1e   :  { %1842 = vsyncpa [#allocation9], 1 }
 0xc1f   :  { %1844 = vsyncpa [#allocation9 + $0x1], 1 }
 0xc20   :  { %1845 = vsyncpa [#allocation12], 1 }
 0xc21   :  { %1847 = vsyncpa [#allocation12 + $0x1], 1 }
 0xc22   :  { %1848 = vsyncpa [#allocation15], 1 }
 0xc23   :  { %1849 = vsyncpa [#allocation18], 1 }
 0xc24   :  { %1850 = vsyncpa [#allocation21], 1 }
 0xc25   :  { %1851 = vsyncpa [#allocation24], 1 }
 0xc26   :  { %1852 = vsyncpa [#allocation27], 1 }
 0xc27   :  { %1853 = vsyncpa [#allocation30], 1 }
 0xc28   :  { %1854 = vsyncpa [#allocation33], 1 }
 0xc29   :  { %1855 = vsyncpa [#allocation36], 1 }
 0xc2a   :  { %1856 = vsyncpa [#allocation39], 1 }
 0xc2b   :  { %1857 = vsyncpa [#allocation10], 1 }
 0xc2c   :  { %1859 = vsyncpa [#allocation10 + $0x1], 1 }

</bundles_post_ra>
